<compile_context>
chip_gen: v7x
topology: tpu7x:2x2x1
jax: 0.10.0
libtpu: 0.0.40
codegen_flags: <defaults>
</compile_context>

<pallas_src>
from functools import partial

import jax
import jax.numpy as jnp
import numpy as np
from jax.experimental import pallas as pl
from jax.experimental.pallas import tpu as pltpu

EPS = 1e-5
H_PAD = 128       # hidden dim padded 64 -> 128 (lane-dense activations)
NC_PAD = 128      # class dim padded 4 -> 128 (lane-dense output block)
NEG_INF = -1e30   # bias for padded classes (softmax weight ~ 0)


def _round_up(x, m):
    return (x + m - 1) // m * m


def feature_learning_kernel(x_ref, w1_ref, s1_ref, t1_ref,
                            w2_ref, s2_ref, t2_ref,
                            w3_ref, s3_ref, t3_ref,
                            wl_ref, bl_ref, out_ref, hp_ref, *, L, TB, H):
    L1 = L + 6            # conv1 valid output length (pad=4, k=3)
    L2 = L + 8            # conv2 / conv3 output length
    LP = L + 10           # zero-bordered canvas length (conv2 needs pad=2)
    L1p = x_ref.shape[1]  # wrapper-padded conv1 output length (multiple of 8)
    KIN = x_ref.shape[2]  # 3 * n_fe (conv1 im2col channels)

    # Zero the canvas border rows (0,1 and L2,L2+1) every step: rows 1 and L2
    # are dirtied by the previous step's h2 store and the scratch starts
    # uninitialized on each core, so unconditional zeroing keeps the kernel
    # correct for any grid sharding.  Only 4 rows per step.
    zrow = jnp.zeros((TB, 2, H), jnp.float32)
    hp_ref[:, 0:2, :] = zrow
    hp_ref[:, L2:LP, :] = zrow

    # ---- conv1 + BN + ReLU: one (TB*L1p, KIN) x (KIN, H) matmul ----
    x2 = x_ref[...].reshape(TB * L1p, KIN)
    h1 = jnp.dot(x2, w1_ref[...], preferred_element_type=jnp.float32)
    h1 = jnp.maximum(h1 * s1_ref[...] + t1_ref[...], 0.0)       # (TB*L1p, H)
    # Stage valid rows into canvas rows [2, 2+L1); wrapper padding rows dropped.
    hp_ref[:, 2:2 + L1, :] = h1.reshape(TB, L1p, H)[:, :L1, :]

    def conv_taps(w_ref, s_ref, t_ref):
        # out[b, l] = sum_k canvas[b, l+k] @ W_k : one lane-dense 2-D matmul
        # per tap on the batch-collapsed activation (no lane concatenate).
        y = jnp.dot(hp_ref[:, 0:L2, :].reshape(TB * L2, H), w_ref[0:H, :],
                    preferred_element_type=jnp.float32)
        y += jnp.dot(hp_ref[:, 1:1 + L2, :].reshape(TB * L2, H), w_ref[H:2 * H, :],
                     preferred_element_type=jnp.float32)
        y += jnp.dot(hp_ref[:, 2:2 + L2, :].reshape(TB * L2, H), w_ref[2 * H:3 * H, :],
                     preferred_element_type=jnp.float32)
        return jnp.maximum(y * s_ref[...] + t_ref[...], 0.0)    # (TB*L2, H)

    # ---- conv2 + BN + ReLU (canvas pad=2 around h1) ----
    h2 = conv_taps(w2_ref, s2_ref, t2_ref)
    # conv3 needs pad=1: h2 occupies canvas rows [1, L2+1); rows 0, L2+1 stay 0.
    hp_ref[:, 1:1 + L2, :] = h2.reshape(TB, L2, H)

    # ---- conv3 + BN + ReLU ----
    h3 = conv_taps(w3_ref, s3_ref, t3_ref)

    # ---- mean over length (1/L2 folded into wl) + linear + softmax ----
    sums = jnp.sum(h3.reshape(TB, L2, H), axis=1)                # (TB, H)
    logits = jnp.dot(sums, wl_ref[...],
                     preferred_element_type=jnp.float32) + bl_ref[...]
    z = logits - jnp.max(logits, axis=-1, keepdims=True)
    e = jnp.exp(z)
    denom = jnp.sum(e, axis=-1, keepdims=True)
    # approx=True would move the divide onto the EUP; kept exact for tight f32
    # verification against the reference.
    out_ref[...] = (e * pl.reciprocal(denom, approx=False)).astype(out_ref.dtype)


def feature_learning_forward(x, kp):
    """x: (B, n_fe, L) float32 (PyTorch NCL layout). Returns (B, n_c) probs."""
    B, n_fe, L = x.shape
    H = kp["w2"].shape[-1]
    n_c = kp["n_c"]

    L1 = L + 6
    L2 = L + 8
    LP = L + 10
    L1p = _round_up(L1, 8)   # sublane-aligned conv1 output length

    if L2 % 8 != 0:
        # TODO(synk): generalize the in-kernel batch/length collapse to lengths
        # where L+8 is not a multiple of 8 (pad the canvas + mask the mean).
        raise NotImplementedError("feature_learning_forward requires (L + 8) % 8 == 0")

    # NCL -> NLC, zero-pad length (conv1 padding = 4 plus alignment padding),
    # im2col the K=3 taps.  Extra im2col rows >= L1 are all-zero and are
    # dropped in the kernel when staging into the canvas.
    x_nlc = jnp.transpose(x, (0, 2, 1))
    x_pad = jnp.pad(x_nlc, ((0, 0), (4, 4 + (L1p - L1)), (0, 0)))   # (B, L1p+2, n_fe)
    x_i2c = jnp.concatenate(
        [x_pad[:, 0:L1p, :], x_pad[:, 1:L1p + 1, :], x_pad[:, 2:L1p + 2, :]],
        axis=-1)                                                    # (B, L1p, 3*n_fe)

    # Batch tiling: pad B to a multiple of TB (padded rows sliced off after the
    # call).  TB is chosen so the grid is >= 2 when possible (dual-core parts)
    # and capped at 128.
    Bp = _round_up(B, 8)
    TB = min(128, _round_up(pl.cdiv(Bp, 2), 8))
    Bp = _round_up(Bp, TB)
    if Bp != B:
        x_i2c = jnp.pad(x_i2c, ((0, Bp - B), (0, 0), (0, 0)))

    # Fold the 1/L2 mean factor into the final linear weight (padded cols stay 0).
    wl_scaled = kp["wl"] * (1.0 / L2)

    def full(shape):
        return pl.BlockSpec(shape, lambda *args, _n=len(shape): (0,) * _n)

    kernel = partial(feature_learning_kernel, L=L, TB=TB, H=H)
    out = pl.pallas_call(
        kernel,
        out_shape=jax.ShapeDtypeStruct((Bp, NC_PAD), jnp.float32),
        grid=(Bp // TB,),
        in_specs=[
            pl.BlockSpec((TB, L1p, 3 * n_fe), lambda b: (b, 0, 0)),
            full((3 * n_fe, H)), full((1, H)), full((1, H)),
            full((3 * H, H)), full((1, H)), full((1, H)),
            full((3 * H, H)), full((1, H)), full((1, H)),
            full((H, NC_PAD)), full((1, NC_PAD)),
        ],
        out_specs=pl.BlockSpec((TB, NC_PAD), lambda b: (b, 0)),
        scratch_shapes=[pltpu.VMEM((TB, LP, H), jnp.float32)],
        compiler_params=pltpu.CompilerParams(
            dimension_semantics=("parallel",),
            vmem_limit_bytes=32 * 1024 * 1024),
    )(x_i2c, kp["w1"], kp["s1"], kp["t1"],
      kp["w2"], kp["s2"], kp["t2"],
      kp["w3"], kp["s3"], kp["t3"],
      wl_scaled, kp["bl"])
    return out[:B, :n_c]


# ----------------------- deterministic parameter init -----------------------

def init_params(key, n_fe=2, n_c=4, n_hidden=64):
    ks = jax.random.split(key, 8)

    def conv(k, cin, cout):
        kw, kb = jax.random.split(k)
        w = jax.random.normal(kw, (cout, cin, 3), jnp.float32) / jnp.sqrt(3.0 * cin)
        b = 0.05 * jax.random.normal(kb, (cout,), jnp.float32)
        return w, b

    def bn(k, c):
        k1, k2, k3, k4 = jax.random.split(k, 4)
        gamma = 1.0 + 0.1 * jax.random.normal(k1, (c,), jnp.float32)
        beta = 0.1 * jax.random.normal(k2, (c,), jnp.float32)
        mean = 0.1 * jax.random.normal(k3, (c,), jnp.float32)
        var = jax.random.uniform(k4, (c,), jnp.float32, minval=0.5, maxval=1.5)
        return gamma, beta, mean, var

    raw = {}
    raw["cw1"], raw["cb1"] = conv(ks[0], n_fe, n_hidden)
    raw["cw2"], raw["cb2"] = conv(ks[1], n_hidden, n_hidden)
    raw["cw3"], raw["cb3"] = conv(ks[2], n_hidden, n_hidden)
    raw["bn1"] = bn(ks[3], n_hidden)
    raw["bn2"] = bn(ks[4], n_hidden)
    raw["bn3"] = bn(ks[5], n_hidden)
    raw["lw"] = 0.125 * jax.random.normal(ks[6], (n_c, n_hidden), jnp.float32)
    raw["lb"] = 0.05 * jax.random.normal(ks[7], (n_c,), jnp.float32)
    return raw


def pack_kernel_params(raw, n_fe=2, n_c=4, n_hidden=64):
    """Fold eval-mode BN + conv bias into per-channel scale/shift, lay conv
    weights out per-tap, and zero-pad hidden/class dims to 128 lanes."""
    H = H_PAD

    def fold_scale_shift(cb, bnp):
        gamma, beta, mean, var = bnp
        s = gamma / jnp.sqrt(var + EPS)
        t = beta + (cb - mean) * s
        s_p = jnp.zeros((1, H), jnp.float32).at[0, :n_hidden].set(s)
        t_p = jnp.zeros((1, H), jnp.float32).at[0, :n_hidden].set(t)
        return s_p, t_p

    def pad_taps(cw, cin_pad):
        # (C_out, C_in, K) -> (K*cin_pad, H); tap k occupies rows
        # [k*cin_pad, (k+1)*cin_pad), zero-padded in both channel dims so
        # padded channels stay exactly zero through ReLU / mean.
        cout, cin, K = cw.shape
        w = jnp.zeros((K * cin_pad, H), jnp.float32)
        for k in range(K):
            w = w.at[k * cin_pad:k * cin_pad + cin, :cout].set(cw[:, :, k].T)
        return w

    kp = {}
    kp["w1"] = pad_taps(raw["cw1"], n_fe)   # (3*n_fe, H): matches wrapper im2col order
    kp["w2"] = pad_taps(raw["cw2"], H)      # (3*H, H): per-tap slices in the kernel
    kp["w3"] = pad_taps(raw["cw3"], H)
    kp["s1"], kp["t1"] = fold_scale_shift(raw["cb1"], raw["bn1"])
    kp["s2"], kp["t2"] = fold_scale_shift(raw["cb2"], raw["bn2"])
    kp["s3"], kp["t3"] = fold_scale_shift(raw["cb3"], raw["bn3"])
    # Final linear padded to (H, NC_PAD); padded class biases are -1e30 so the
    # in-kernel softmax assigns them ~0 probability.
    kp["wl"] = jnp.zeros((H, NC_PAD), jnp.float32).at[:n_hidden, :n_c].set(raw["lw"].T)
    kp["bl"] = jnp.full((1, NC_PAD), NEG_INF, jnp.float32).at[0, :n_c].set(raw["lb"])
    kp["n_c"] = n_c
    return kp


# -------------------------- plain-JAX reference -----------------------------

def reference_forward(x, raw):
    def conv_bn_relu(h, cw, cb, bnp, pad):
        y = jax.lax.conv_general_dilated(
            h, cw, window_strides=(1,), padding=[(pad, pad)],
            dimension_numbers=("NCH", "OIH", "NCH"))
        y = y + cb[None, :, None]
        gamma, beta, mean, var = bnp
        y = (y - mean[None, :, None]) / jnp.sqrt(var[None, :, None] + EPS)
        y = y * gamma[None, :, None] + beta[None, :, None]
        return jax.nn.relu(y)

    h = conv_bn_relu(x, raw["cw1"], raw["cb1"], raw["bn1"], 4)
    h = conv_bn_relu(h, raw["cw2"], raw["cb2"], raw["bn2"], 2)
    h = conv_bn_relu(h, raw["cw3"], raw["cb3"], raw["bn3"], 1)
    m = jnp.mean(h, axis=2)
    logits = m @ raw["lw"].T + raw["lb"]
    return jax.nn.softmax(logits, axis=1)


if __name__ == "__main__":
    key = jax.random.PRNGKey(0)
    p_key, x_key = jax.random.split(key)
    raw = init_params(p_key, n_fe=2, n_c=4, n_hidden=64)
    kp = pack_kernel_params(raw, n_fe=2, n_c=4, n_hidden=64)

    # small shapes: batch=2, n_fe=2 channels, length=16 (PyTorch NCL)
    x = jax.random.normal(x_key, (2, 2, 16), jnp.float32)

    out = feature_learning_forward(x, kp)
    out = jax.block_until_ready(out)

    ref = reference_forward(x, raw)
    assert out.shape == (2, 4)
    np.testing.assert_allclose(np.asarray(out), np.asarray(ref), rtol=1e-4, atol=1e-5)
    print("KERNEL_OK")
</pallas_src>

<mosaic_0001>
module attributes {stable_mosaic.version = 11 : i64} {
  func.func @feature_learning_kernel(%arg0: i32, %arg1: memref<8x24x6xf32, #tpu.memory_space<vmem>>, %arg2: memref<6x128xf32, #tpu.memory_space<vmem>>, %arg3: memref<1x128xf32, #tpu.memory_space<vmem>>, %arg4: memref<1x128xf32, #tpu.memory_space<vmem>>, %arg5: memref<384x128xf32, #tpu.memory_space<vmem>>, %arg6: memref<1x128xf32, #tpu.memory_space<vmem>>, %arg7: memref<1x128xf32, #tpu.memory_space<vmem>>, %arg8: memref<384x128xf32, #tpu.memory_space<vmem>>, %arg9: memref<1x128xf32, #tpu.memory_space<vmem>>, %arg10: memref<1x128xf32, #tpu.memory_space<vmem>>, %arg11: memref<128x128xf32, #tpu.memory_space<vmem>>, %arg12: memref<1x128xf32, #tpu.memory_space<vmem>>, %arg13: memref<8x128xf32, #tpu.memory_space<vmem>>, %arg14: memref<8x26x128xf32, #tpu.memory_space<vmem>>) attributes {dimension_semantics = [#tpu.dimension_semantics<parallel>], iteration_bounds = array<i64: 1>, scalar_prefetch = 0 : i64, scratch_operands = 1 : i64, tpu.core_type = #tpu.core_type<tc>, window_params = [{transform_indices = @transform_0, window_bounds = array<i64: 8, 24, 6>}, {pipeline_mode = #tpu.pipeline_mode<synchronous>, transform_indices = @transform_1, window_bounds = array<i64: 6, 128>}, {pipeline_mode = #tpu.pipeline_mode<synchronous>, transform_indices = @transform_2, window_bounds = array<i64: 1, 128>}, {pipeline_mode = #tpu.pipeline_mode<synchronous>, transform_indices = @transform_3, window_bounds = array<i64: 1, 128>}, {pipeline_mode = #tpu.pipeline_mode<synchronous>, transform_indices = @transform_4, window_bounds = array<i64: 384, 128>}, {pipeline_mode = #tpu.pipeline_mode<synchronous>, transform_indices = @transform_5, window_bounds = array<i64: 1, 128>}, {pipeline_mode = #tpu.pipeline_mode<synchronous>, transform_indices = @transform_6, window_bounds = array<i64: 1, 128>}, {pipeline_mode = #tpu.pipeline_mode<synchronous>, transform_indices = @transform_7, window_bounds = array<i64: 384, 128>}, {pipeline_mode = #tpu.pipeline_mode<synchronous>, transform_indices = @transform_8, window_bounds = array<i64: 1, 128>}, {pipeline_mode = #tpu.pipeline_mode<synchronous>, transform_indices = @transform_9, window_bounds = array<i64: 1, 128>}, {pipeline_mode = #tpu.pipeline_mode<synchronous>, transform_indices = @transform_10, window_bounds = array<i64: 128, 128>}, {pipeline_mode = #tpu.pipeline_mode<synchronous>, transform_indices = @transform_11, window_bounds = array<i64: 1, 128>}, {transform_indices = @transform_12, window_bounds = array<i64: 8, 128>}]} {
    %cst = arith.constant 0.000000e+00 : f32
    %0 = vector.broadcast %cst : f32 to vector<8x2x128xf32>
    %c0 = arith.constant 0 : index
    %c0_0 = arith.constant 0 : index
    %c0_1 = arith.constant 0 : index
    %1 = vector.load %arg14[%c0, %c0_0, %c0_1] : memref<8x26x128xf32, #tpu.memory_space<vmem>>, vector<8x2x128xf32>
    tpu.vector_store %arg14[%c0, %c0_0, %c0_1], %0 {strides = array<i32>} : memref<8x26x128xf32, #tpu.memory_space<vmem>>, vector<8x2x128xf32>,
    %c0_2 = arith.constant 0 : index
    %c24 = arith.constant 24 : index
    %c0_3 = arith.constant 0 : index
    %2 = vector.load %arg14[%c0_2, %c24, %c0_3] : memref<8x26x128xf32, #tpu.memory_space<vmem>>, vector<8x2x128xf32>
    tpu.vector_store %arg14[%c0_2, %c24, %c0_3], %0 {strides = array<i32>} : memref<8x26x128xf32, #tpu.memory_space<vmem>>, vector<8x2x128xf32>,
    %c0_4 = arith.constant 0 : index
    %c0_5 = arith.constant 0 : index
    %c0_6 = arith.constant 0 : index
    %3 = vector.load %arg1[%c0_4, %c0_5, %c0_6] : memref<8x24x6xf32, #tpu.memory_space<vmem>>, vector<8x24x6xf32>
    %4 = vector.shape_cast %3 : vector<8x24x6xf32> to vector<192x6xf32>
    %c0_7 = arith.constant 0 : index
    %c0_8 = arith.constant 0 : index
    %5 = vector.load %arg2[%c0_7, %c0_8] : memref<6x128xf32, #tpu.memory_space<vmem>>, vector<6x128xf32>
    %cst_9 = arith.constant dense<0.000000e+00> : vector<192x128xf32>
    %6 = tpu.matmul %4, %5, %cst_9 {dimension_numbers = #tpu.dot_dimension_numbers<[1], [0], [0], [1], [0, 0, 1, 1], [], []>} : vector<192x6xf32>, vector<6x128xf32>, vector<192x128xf32> -> vector<192x128xf32>
    %c0_10 = arith.constant 0 : index
    %c0_11 = arith.constant 0 : index
    %7 = vector.load %arg3[%c0_10, %c0_11] : memref<1x128xf32, #tpu.memory_space<vmem>>, vector<1x128xf32>
    %8 = vector.broadcast %7 : vector<1x128xf32> to vector<192x128xf32>
    %9 = arith.mulf %6, %8 : vector<192x128xf32>
    %c0_12 = arith.constant 0 : index
    %c0_13 = arith.constant 0 : index
    %10 = vector.load %arg4[%c0_12, %c0_13] : memref<1x128xf32, #tpu.memory_space<vmem>>, vector<1x128xf32>
    %11 = vector.broadcast %10 : vector<1x128xf32> to vector<192x128xf32>
    %12 = arith.addf %9, %11 : vector<192x128xf32>
    %cst_14 = arith.constant 0.000000e+00 : f32
    %13 = vector.broadcast %cst_14 : f32 to vector<192x128xf32>
    %14 = arith.maximumf %12, %13 : vector<192x128xf32>
    %15 = vector.shape_cast %14 : vector<192x128xf32> to vector<8x24x128xf32>
    %16 = vector.extract_strided_slice %15 {offsets = [0, 0, 0], sizes = [8, 22, 128], strides = [1, 1, 1]} : vector<8x24x128xf32> to vector<8x22x128xf32>
    %c0_15 = arith.constant 0 : index
    %c2 = arith.constant 2 : index
    %c0_16 = arith.constant 0 : index
    %17 = vector.load %arg14[%c0_15, %c2, %c0_16] : memref<8x26x128xf32, #tpu.memory_space<vmem>>, vector<8x22x128xf32>
    tpu.vector_store %arg14[%c0_15, %c2, %c0_16], %16 {strides = array<i32>} : memref<8x26x128xf32, #tpu.memory_space<vmem>>, vector<8x22x128xf32>,
    %c0_17 = arith.constant 0 : index
    %c0_18 = arith.constant 0 : index
    %c0_19 = arith.constant 0 : index
    %18 = vector.load %arg14[%c0_17, %c0_18, %c0_19] : memref<8x26x128xf32, #tpu.memory_space<vmem>>, vector<8x24x128xf32>
    %19 = vector.shape_cast %18 : vector<8x24x128xf32> to vector<192x128xf32>
    %c0_20 = arith.constant 0 : index
    %c0_21 = arith.constant 0 : index
    %20 = vector.load %arg5[%c0_20, %c0_21] : memref<384x128xf32, #tpu.memory_space<vmem>>, vector<128x128xf32>
    %cst_22 = arith.constant dense<0.000000e+00> : vector<192x128xf32>
    %21 = tpu.matmul %19, %20, %cst_22 {dimension_numbers = #tpu.dot_dimension_numbers<[1], [0], [0], [1], [0, 0, 1, 1], [], []>} : vector<192x128xf32>, vector<128x128xf32>, vector<192x128xf32> -> vector<192x128xf32>
    %c0_23 = arith.constant 0 : index
    %c1 = arith.constant 1 : index
    %c0_24 = arith.constant 0 : index
    %22 = vector.load %arg14[%c0_23, %c1, %c0_24] : memref<8x26x128xf32, #tpu.memory_space<vmem>>, vector<8x24x128xf32>
    %23 = vector.shape_cast %22 : vector<8x24x128xf32> to vector<192x128xf32>
    %c128 = arith.constant 128 : index
    %c0_25 = arith.constant 0 : index
    %24 = vector.load %arg5[%c128, %c0_25] : memref<384x128xf32, #tpu.memory_space<vmem>>, vector<128x128xf32>
    %cst_26 = arith.constant dense<0.000000e+00> : vector<192x128xf32>
    %25 = tpu.matmul %23, %24, %cst_26 {dimension_numbers = #tpu.dot_dimension_numbers<[1], [0], [0], [1], [0, 0, 1, 1], [], []>} : vector<192x128xf32>, vector<128x128xf32>, vector<192x128xf32> -> vector<192x128xf32>
    %26 = arith.addf %21, %25 : vector<192x128xf32>
    %c0_27 = arith.constant 0 : index
    %c2_28 = arith.constant 2 : index
    %c0_29 = arith.constant 0 : index
    %27 = vector.load %arg14[%c0_27, %c2_28, %c0_29] : memref<8x26x128xf32, #tpu.memory_space<vmem>>, vector<8x24x128xf32>
    %28 = vector.shape_cast %27 : vector<8x24x128xf32> to vector<192x128xf32>
    %c256 = arith.constant 256 : index
    %c0_30 = arith.constant 0 : index
    %29 = vector.load %arg5[%c256, %c0_30] : memref<384x128xf32, #tpu.memory_space<vmem>>, vector<128x128xf32>
    %cst_31 = arith.constant dense<0.000000e+00> : vector<192x128xf32>
    %30 = tpu.matmul %28, %29, %cst_31 {dimension_numbers = #tpu.dot_dimension_numbers<[1], [0], [0], [1], [0, 0, 1, 1], [], []>} : vector<192x128xf32>, vector<128x128xf32>, vector<192x128xf32> -> vector<192x128xf32>
    %31 = arith.addf %26, %30 : vector<192x128xf32>
    %c0_32 = arith.constant 0 : index
    %c0_33 = arith.constant 0 : index
    %32 = vector.load %arg6[%c0_32, %c0_33] : memref<1x128xf32, #tpu.memory_space<vmem>>, vector<1x128xf32>
    %33 = vector.broadcast %32 : vector<1x128xf32> to vector<192x128xf32>
    %34 = arith.mulf %31, %33 : vector<192x128xf32>
    %c0_34 = arith.constant 0 : index
    %c0_35 = arith.constant 0 : index
    %35 = vector.load %arg7[%c0_34, %c0_35] : memref<1x128xf32, #tpu.memory_space<vmem>>, vector<1x128xf32>
    %36 = vector.broadcast %35 : vector<1x128xf32> to vector<192x128xf32>
    %37 = arith.addf %34, %36 : vector<192x128xf32>
    %cst_36 = arith.constant 0.000000e+00 : f32
    %38 = vector.broadcast %cst_36 : f32 to vector<192x128xf32>
    %39 = arith.maximumf %37, %38 : vector<192x128xf32>
    %40 = vector.shape_cast %39 : vector<192x128xf32> to vector<8x24x128xf32>
    %c0_37 = arith.constant 0 : index
    %c1_38 = arith.constant 1 : index
    %c0_39 = arith.constant 0 : index
    %41 = vector.load %arg14[%c0_37, %c1_38, %c0_39] : memref<8x26x128xf32, #tpu.memory_space<vmem>>, vector<8x24x128xf32>
    tpu.vector_store %arg14[%c0_37, %c1_38, %c0_39], %40 {strides = array<i32>} : memref<8x26x128xf32, #tpu.memory_space<vmem>>, vector<8x24x128xf32>,
    %c0_40 = arith.constant 0 : index
    %c0_41 = arith.constant 0 : index
    %c0_42 = arith.constant 0 : index
    %42 = vector.load %arg14[%c0_40, %c0_41, %c0_42] : memref<8x26x128xf32, #tpu.memory_space<vmem>>, vector<8x24x128xf32>
    %43 = vector.shape_cast %42 : vector<8x24x128xf32> to vector<192x128xf32>
    %c0_43 = arith.constant 0 : index
    %c0_44 = arith.constant 0 : index
    %44 = vector.load %arg8[%c0_43, %c0_44] : memref<384x128xf32, #tpu.memory_space<vmem>>, vector<128x128xf32>
    %cst_45 = arith.constant dense<0.000000e+00> : vector<192x128xf32>
    %45 = tpu.matmul %43, %44, %cst_45 {dimension_numbers = #tpu.dot_dimension_numbers<[1], [0], [0], [1], [0, 0, 1, 1], [], []>} : vector<192x128xf32>, vector<128x128xf32>, vector<192x128xf32> -> vector<192x128xf32>
    %c0_46 = arith.constant 0 : index
    %c1_47 = arith.constant 1 : index
    %c0_48 = arith.constant 0 : index
    %46 = vector.load %arg14[%c0_46, %c1_47, %c0_48] : memref<8x26x128xf32, #tpu.memory_space<vmem>>, vector<8x24x128xf32>
    %47 = vector.shape_cast %46 : vector<8x24x128xf32> to vector<192x128xf32>
    %c128_49 = arith.constant 128 : index
    %c0_50 = arith.constant 0 : index
    %48 = vector.load %arg8[%c128_49, %c0_50] : memref<384x128xf32, #tpu.memory_space<vmem>>, vector<128x128xf32>
    %cst_51 = arith.constant dense<0.000000e+00> : vector<192x128xf32>
    %49 = tpu.matmul %47, %48, %cst_51 {dimension_numbers = #tpu.dot_dimension_numbers<[1], [0], [0], [1], [0, 0, 1, 1], [], []>} : vector<192x128xf32>, vector<128x128xf32>, vector<192x128xf32> -> vector<192x128xf32>
    %50 = arith.addf %45, %49 : vector<192x128xf32>
    %c0_52 = arith.constant 0 : index
    %c2_53 = arith.constant 2 : index
    %c0_54 = arith.constant 0 : index
    %51 = vector.load %arg14[%c0_52, %c2_53, %c0_54] : memref<8x26x128xf32, #tpu.memory_space<vmem>>, vector<8x24x128xf32>
    %52 = vector.shape_cast %51 : vector<8x24x128xf32> to vector<192x128xf32>
    %c256_55 = arith.constant 256 : index
    %c0_56 = arith.constant 0 : index
    %53 = vector.load %arg8[%c256_55, %c0_56] : memref<384x128xf32, #tpu.memory_space<vmem>>, vector<128x128xf32>
    %cst_57 = arith.constant dense<0.000000e+00> : vector<192x128xf32>
    %54 = tpu.matmul %52, %53, %cst_57 {dimension_numbers = #tpu.dot_dimension_numbers<[1], [0], [0], [1], [0, 0, 1, 1], [], []>} : vector<192x128xf32>, vector<128x128xf32>, vector<192x128xf32> -> vector<192x128xf32>
    %55 = arith.addf %50, %54 : vector<192x128xf32>
    %c0_58 = arith.constant 0 : index
    %c0_59 = arith.constant 0 : index
    %56 = vector.load %arg9[%c0_58, %c0_59] : memref<1x128xf32, #tpu.memory_space<vmem>>, vector<1x128xf32>
    %57 = vector.broadcast %56 : vector<1x128xf32> to vector<192x128xf32>
    %58 = arith.mulf %55, %57 : vector<192x128xf32>
    %c0_60 = arith.constant 0 : index
    %c0_61 = arith.constant 0 : index
    %59 = vector.load %arg10[%c0_60, %c0_61] : memref<1x128xf32, #tpu.memory_space<vmem>>, vector<1x128xf32>
    %60 = vector.broadcast %59 : vector<1x128xf32> to vector<192x128xf32>
    %61 = arith.addf %58, %60 : vector<192x128xf32>
    %cst_62 = arith.constant 0.000000e+00 : f32
    %62 = vector.broadcast %cst_62 : f32 to vector<192x128xf32>
    %63 = arith.maximumf %61, %62 : vector<192x128xf32>
    %64 = vector.shape_cast %63 : vector<192x128xf32> to vector<8x24x128xf32>
    %cst_63 = arith.constant dense<0.000000e+00> : vector<8x128xf32>
    %65 = vector.multi_reduction <add>, %64, %cst_63 [1] : vector<8x24x128xf32> to vector<8x128xf32>
    %c0_64 = arith.constant 0 : index
    %c0_65 = arith.constant 0 : index
    %66 = vector.load %arg11[%c0_64, %c0_65] : memref<128x128xf32, #tpu.memory_space<vmem>>, vector<128x128xf32>
    %cst_66 = arith.constant dense<0.000000e+00> : vector<8x128xf32>
    %67 = tpu.matmul %65, %66, %cst_66 {dimension_numbers = #tpu.dot_dimension_numbers<[1], [0], [0], [1], [0, 0, 1, 1], [], []>} : vector<8x128xf32>, vector<128x128xf32>, vector<8x128xf32> -> vector<8x128xf32>
    %c0_67 = arith.constant 0 : index
    %c0_68 = arith.constant 0 : index
    %68 = vector.load %arg12[%c0_67, %c0_68] : memref<1x128xf32, #tpu.memory_space<vmem>>, vector<1x128xf32>
    %69 = vector.broadcast %68 : vector<1x128xf32> to vector<8x128xf32>
    %70 = arith.addf %67, %69 : vector<8x128xf32>
    %cst_69 = arith.constant dense<0xFF800000> : vector<8xf32>
    %71 = vector.multi_reduction <maximumf>, %70, %cst_69 [1] : vector<8x128xf32> to vector<8xf32>
    %72 = vector.shape_cast %71 : vector<8xf32> to vector<8x1xf32>
    %73 = vector.broadcast %72 : vector<8x1xf32> to vector<8x128xf32>
    %74 = arith.subf %70, %73 : vector<8x128xf32>
    %75 = math.exp %74 : vector<8x128xf32>
    %cst_70 = arith.constant dense<0.000000e+00> : vector<8xf32>
    %76 = vector.multi_reduction <add>, %75, %cst_70 [1] : vector<8x128xf32> to vector<8xf32>
    %77 = vector.shape_cast %76 : vector<8xf32> to vector<8x1xf32>
    %78 = tpu.reciprocal %77 : vector<8x1xf32> -> vector<8x1xf32>
    %79 = vector.broadcast %78 : vector<8x1xf32> to vector<8x128xf32>
    %80 = arith.mulf %75, %79 : vector<8x128xf32>
    %c0_71 = arith.constant 0 : index
    %c0_72 = arith.constant 0 : index
    %81 = vector.load %arg13[%c0_71, %c0_72] : memref<8x128xf32, #tpu.memory_space<vmem>>, vector<8x128xf32>
    tpu.vector_store %arg13[%c0_71, %c0_72], %80 {strides = array<i32>} : memref<8x128xf32, #tpu.memory_space<vmem>>, vector<8x128xf32>,
    return
  }
  func.func @transform_0(%arg0: i32) -> (i32, i32, i32) {
    %c0_i32 = arith.constant 0 : i32
    %c0_i32_0 = arith.constant 0 : i32
    %c0_i32_1 = arith.constant 0 : i32
    return %arg0, %c0_i32, %c0_i32_0 : i32, i32, i32
  }
  func.func @transform_1(%arg0: i32) -> (i32, i32) {
    %c0_i32 = arith.constant 0 : i32
    %c0_i32_0 = arith.constant 0 : i32
    %c0_i32_1 = arith.constant 0 : i32
    return %c0_i32, %c0_i32_0 : i32, i32
  }
  func.func @transform_2(%arg0: i32) -> (i32, i32) {
    %c0_i32 = arith.constant 0 : i32
    %c0_i32_0 = arith.constant 0 : i32
    %c0_i32_1 = arith.constant 0 : i32
    return %c0_i32, %c0_i32_0 : i32, i32
  }
  func.func @transform_3(%arg0: i32) -> (i32, i32) {
    %c0_i32 = arith.constant 0 : i32
    %c0_i32_0 = arith.constant 0 : i32
    %c0_i32_1 = arith.constant 0 : i32
    return %c0_i32, %c0_i32_0 : i32, i32
  }
  func.func @transform_4(%arg0: i32) -> (i32, i32) {
    %c0_i32 = arith.constant 0 : i32
    %c0_i32_0 = arith.constant 0 : i32
    %c0_i32_1 = arith.constant 0 : i32
    return %c0_i32, %c0_i32_0 : i32, i32
  }
  func.func @transform_5(%arg0: i32) -> (i32, i32) {
    %c0_i32 = arith.constant 0 : i32
    %c0_i32_0 = arith.constant 0 : i32
    %c0_i32_1 = arith.constant 0 : i32
    return %c0_i32, %c0_i32_0 : i32, i32
  }
  func.func @transform_6(%arg0: i32) -> (i32, i32) {
    %c0_i32 = arith.constant 0 : i32
    %c0_i32_0 = arith.constant 0 : i32
    %c0_i32_1 = arith.constant 0 : i32
    return %c0_i32, %c0_i32_0 : i32, i32
  }
  func.func @transform_7(%arg0: i32) -> (i32, i32) {
    %c0_i32 = arith.constant 0 : i32
    %c0_i32_0 = arith.constant 0 : i32
    %c0_i32_1 = arith.constant 0 : i32
    return %c0_i32, %c0_i32_0 : i32, i32
  }
  func.func @transform_8(%arg0: i32) -> (i32, i32) {
    %c0_i32 = arith.constant 0 : i32
    %c0_i32_0 = arith.constant 0 : i32
    %c0_i32_1 = arith.constant 0 : i32
    return %c0_i32, %c0_i32_0 : i32, i32
  }
  func.func @transform_9(%arg0: i32) -> (i32, i32) {
    %c0_i32 = arith.constant 0 : i32
    %c0_i32_0 = arith.constant 0 : i32
    %c0_i32_1 = arith.constant 0 : i32
    return %c0_i32, %c0_i32_0 : i32, i32
  }
  func.func @transform_10(%arg0: i32) -> (i32, i32) {
    %c0_i32 = arith.constant 0 : i32
    %c0_i32_0 = arith.constant 0 : i32
    %c0_i32_1 = arith.constant 0 : i32
    return %c0_i32, %c0_i32_0 : i32, i32
  }
  func.func @transform_11(%arg0: i32) -> (i32, i32) {
    %c0_i32 = arith.constant 0 : i32
    %c0_i32_0 = arith.constant 0 : i32
    %c0_i32_1 = arith.constant 0 : i32
    return %c0_i32, %c0_i32_0 : i32, i32
  }
  func.func @transform_12(%arg0: i32) -> (i32, i32) {
    %c0_i32 = arith.constant 0 : i32
    %c0_i32_0 = arith.constant 0 : i32
    return %arg0, %c0_i32 : i32, i32
  }
}

</mosaic_0001>

<bundles_post_ra>
// kernel: tpu_custom_call.1
= control target key start
LH: loop header
LB: loop body
LE: loop exit
PB: predicated region body
PF: predicated region fallthrough
CT: control target
= control target key end

     0   :  { %17 = vsyncpa [#allocation4], 0  ;;  %s4042_s0 = inlined_call_operand.vmem [shape: f32[8,24,6], index: 0, kind: input, shape index: {}]   ;;  %s4043_s1 = inlined_call_operand.vmem [shape: f32[6,128], index: 1, kind: input, shape index: {}]   ;;  %s4044_s2 = inlined_call_operand.vmem [shape: f32[1,128], index: 2, kind: input, shape index: {}]   ;;  %s4045_s3 = inlined_call_operand.vmem [shape: f32[1,128], index: 3, kind: input, shape index: {}]   ;;  %s4046_s4 = inlined_call_operand.hbm [shape: f32[384,128], index: 4, kind: input, shape index: {}]   ;;  %s4047_s5 = inlined_call_operand.vmem [shape: f32[1,128], index: 5, kind: input, shape index: {}]   ;;  %s4048_s6 = inlined_call_operand.vmem [shape: f32[1,128], index: 6, kind: input, shape index: {}]   ;;  %s4049_s7 = inlined_call_operand.hbm [shape: f32[384,128], index: 7, kind: input, shape index: {}]   ;;  %s4050_s8 = inlined_call_operand.vmem [shape: f32[1,128], index: 8, kind: input, shape index: {}]   ;;  %s4051_s9 = inlined_call_operand.vmem [shape: f32[1,128], index: 9, kind: input, shape index: {}]   ;;  %s4052_s10 = inlined_call_operand.vmem [shape: f32[128,128], index: 10, kind: input, shape index: {}]   ;;  %s4053_s11 = inlined_call_operand.vmem [shape: f32[1,128], index: 11, kind: input, shape index: {}]   ;;  %s4054_s12 = inlined_call_operand.hbm [shape: f32[8,128], index: 12, kind: output, shape index: {}]  }
   0x1   :  { %18 = vsyncpa [#allocation7], 0 }
   0x2   :  { %19 = vsyncpa [#allocation5], 0  ;;  %s3476_s21 = smov [#allocation3]   ;;  %s3404_s25 = scalar_lea.hbm %s4046_s4, 6144 }
   0x3   :  { %s33_s22 = sshll.u32 %s3476_s21, 4  ;;  %p3405_p0 = scmp.ne.s32.totalorder %s4046_s4, %s3404_s25  ;;  %s34_s22 = int_to_ptr.vmem [resolvable:$true] %s33_s22 }
   0x4   :  { %p3408_p1 = scmp.lt.u32.totalorder %s3404_s25, %s4046_s4 }
   0x6   :  { %p3410_p2 = pnand %p3408_p1, %p3405_p0 }
   0x8   :  { %3413 = shalt.err (!%p3410_p2)
}
   0x9   :  { %s3414_s30 = scalar_lea.vmem %s34_s22, 6144  ;;  %p3419_p4 = scmp.lt.s32.totalorder %s34_s22, %s34_s22 }
   0xa   :  { %p3415_p3 = scmp.ne.s32.totalorder %s34_s22, %s3414_s30  ;;  %p3420_p5 = scmp.lt.s32.totalorder %s3414_s30, %s3414_s30 }
   0xc   :  { %p3421_p6 = por %p3420_p5, %p3419_p4 }
   0xe   :  { %p3422_p7 = pnand %p3421_p6, %p3415_p3 }
  0x10   :  { %3425 = shalt.err (!%p3422_p7)
}
  0x11   :  { %s3477_s13 = smov 128   ;;  %s3478_s14 = smov 8  }
  0x12   :  { %39 = dma.hbm_to_vmem [thread:$0]  %s4046_s4, 6144, %s34_s22, [#allocation4], %s3477_s13, %s3477_s13, %s3478_s14  }
  0x13   :  { %s3479_s17 = smov [#allocation6]   ;;  %s3426_s21 = scalar_lea.hbm %s4049_s7, 6144 }
  0x14   :  { %s49_s18 = sshll.u32 %s3479_s17, 4  ;;  %p3427_p8 = scmp.ne.s32.totalorder %s4049_s7, %s3426_s21  ;;  %s50_s18 = int_to_ptr.vmem [resolvable:$true] %s49_s18 }
  0x15   :  { %p3430_p9 = scmp.lt.u32.totalorder %s3426_s21, %s4049_s7 }
  0x17   :  { %p3432_p10 = pnand %p3430_p9, %p3427_p8 }
  0x19   :  { %3435 = shalt.err (!%p3432_p10)
}
  0x1a   :  { %s3436_s27 = scalar_lea.vmem %s50_s18, 6144  ;;  %p3441_p12 = scmp.lt.s32.totalorder %s50_s18, %s50_s18 }
  0x1b   :  { %p3437_p11 = scmp.ne.s32.totalorder %s50_s18, %s3436_s27  ;;  %p3442_p13 = scmp.lt.s32.totalorder %s3436_s27, %s3436_s27 }
  0x1d   :  { %p3443_p0 = por %p3442_p13, %p3441_p12 }
  0x1f   :  { %p3444_p1 = pnand %p3443_p0, %p3437_p11 }
  0x21   :  { %3447 = shalt.err (!%p3444_p1)
}
  0x22   :  { %55 = dma.hbm_to_vmem [thread:$0]  %s4049_s7, 6144, %s50_s18, [#allocation7], %s3477_s13, %s3477_s13, %s3478_s14  }
  0x23   :  { %3470 = dma.done.wait [#allocation4], 6144  }
  0x24   :  { %3471 = vsyncadd [#allocation4], 4294961152 }
  0x25   :  { %3472 = dma.done.wait [#allocation7], 6144  }
  0x26   :  { %3473 = vsyncadd [#allocation7], 4294961152  ;;  %vm184_vm0 = vcmask 1045504   ;;  %vm111_vm1 = vcmask 48128   ;;  %v110_v0 = vld [vmem:[%s4043_s1] sm:$0x3f] }
  0x27   :  { %v86_v1 = vld [vmem:[%s4042_s0] sm:$0xff]  ;;  %v87_v2 = vld [vmem:[%s4042_s0 + $0x8] sm:$0xff]  ;;  %2597 = vmatprep.subr.msk.mxu0 %vm184_vm0, %v110_v0  ;;  %v88_v3 = vld [vmem:[%s4042_s0 + $0x10] sm:$0xff]  ;;  %3294 = vmatprep.subr.msk.mxu1 %vm184_vm0, %v110_v0  ;;  %v3480_v46 = vmov 0.0   ;;  %vm3482_vm2 = vmmov 0   ;;  %vm2172_vm3 = vcmask 1041409  }
  0x28   :  { %2599 = vmatprep.mubr.msk.f32.mxu0 %vm111_vm1, %v86_v1  ;;  %2598 = vmatpush3.msk.msra.mxu0 %vm184_vm0, %v110_v0  ;;  %v89_v4 = vld [vmem:[%s4042_s0 + $0x18] sm:$0xff]  ;;  %v90_v5 = vld [vmem:[%s4042_s0 + $0x20] sm:$0xff]  ;;  %v103_v7 = vld [vmem:[%s4042_s0 + $0x88] sm:$0xff]  ;;  %70 = vst [vmem:[#allocation2] sm:$0x3] %v3480_v46  ;;  %vm2174_vm4 = vcmask 1042434  }
  0x29   :  { %2600 = vmatmul.mubr.msk.f32.vlgmr.msra.gmra.mrb[0].mxu0 %vm111_vm1, %v87_v2  ;;  %3295 = vmatpush3.msk.msra.mxu1 %vm184_vm0, %v110_v0  ;;  %v102_v6 = vld [vmem:[%s4042_s0 + $0x80] sm:$0xff]  ;;  %v104_v8 = vld [vmem:[%s4042_s0 + $0x90] sm:$0xff]  ;;  %v91_v9 = vld [vmem:[%s4042_s0 + $0x28] sm:$0xff]  ;;  %71 = vst [vmem:[#allocation2 + $0x20] sm:$0x3] %v3480_v46  ;;  %vm2176_vm5 = vcmask 1043459  }
  0x2a   :  { %2602 = vmatprep.mubr.msk.f32.mxu0 %vm111_vm1, %v88_v3  ;;  %2623 = vmatprep.mubr.msk.f32.mxu1 %vm111_vm1, %v102_v6  ;;  %v105_v10 = vld [vmem:[%s4042_s0 + $0x98] sm:$0xff]  ;;  %v547_v11 = vld [vmem:[#allocation3 + $0x80] sm:$0xff]  ;;  %v548_v12 = vld [vmem:[#allocation3 + $0x88] sm:$0xff]  ;;  %72 = vst [vmem:[#allocation2 + $0x40] sm:$0x3] %v3480_v46  ;;  %vm2178_vm6 = vcmask 1044484  }
  0x2b   :  { %2624 = vmatmul.mubr.msk.f32.vlgmr.msra.gmra.mrb[0].mxu1 %vm111_vm1, %v103_v7  ;;  %v92_v13 = vld [vmem:[%s4042_s0 + $0x30] sm:$0xff]  ;;  %v106_v14 = vld [vmem:[%s4042_s0 + $0xa0] sm:$0xff]  ;;  %v3078_v15 = vpack.c.bf16 %v548_v12, %v547_v11  ;;  %v550_v17 = vld [vmem:[#allocation3 + $0x98] sm:$0xff]  ;;  %73 = vst [vmem:[#allocation2 + $0x60] sm:$0x3] %v3480_v46  ;;  %vm2180_vm7 = vcmask 1045509  }
  0x2c   :  { %2626 = vmatprep.mubr.msk.f32.mxu1 %vm111_vm1, %v104_v8  ;;  %v549_v16 = vld [vmem:[#allocation3 + $0x90] sm:$0xff]  ;;  %v93_v18 = vld [vmem:[%s4042_s0 + $0x38] sm:$0xff]  ;;  %v94_v19 = vld [vmem:[%s4042_s0 + $0x40] sm:$0xff]  ;;  %74 = vst [vmem:[#allocation2 + $0x80] sm:$0x3] %v3480_v46  ;;  %vm2182_vm8 = vcmask 1046534  }
  0x2d   :  { %2603 = vmatmul.mubr.msk.f32.gmra.mrb[2].mxu0 %vm111_vm1, %v89_v4  ;;  %v107_v20 = vld [vmem:[%s4042_s0 + $0xa8] sm:$0xff]  ;;  %v108_v21 = vld [vmem:[%s4042_s0 + $0xb0] sm:$0xff]  ;;  %3079 = vmatprep.subr.bf16.mxu1 %v3078_v15  ;;  %v3082_v22 = vpack.c.bf16 %v550_v17, %v549_v16  ;;  %v551_v23 = vld [vmem:[#allocation3 + $0xa0] sm:$0xff]  ;;  %75 = vst [vmem:[#allocation2 + $0xa0] sm:$0x3] %v3480_v46  ;;  %vm2184_vm9 = vcmask 1047559  }
  0x2e   :  { %2605 = vmatprep.mubr.msk.f32.mxu0 %vm111_vm1, %v90_v5  ;;  %v552_v24 = vld [vmem:[#allocation3 + $0xa8] sm:$0xff]  ;;  %3081 = vmatpush3.bf16.msra.mxu1 %v3078_v15  ;;  %v109_v26 = vld [vmem:[%s4042_s0 + $0xb8] sm:$0xff]  ;;  %v553_v28 = vld [vmem:[#allocation3 + $0xb0] sm:$0xff]  ;;  %76 = vst [vmem:[#allocation2 + $0xc0] sm:$0x3] %v3480_v46 }
  0x2f   :  { %2627 = vmatmul.mubr.msk.f32.gmra.mrb[2].mxu1 %vm111_vm1, %v105_v10  ;;  %v95_v25 = vld [vmem:[%s4042_s0 + $0x48] sm:$0xff]  ;;  %v3086_v27 = vpack.c.bf16 %v552_v24, %v551_v23  ;;  %v554_v29 = vld [vmem:[#allocation3 + $0xb8] sm:$0xff]  ;;  %v96_v30 = vld [vmem:[%s4042_s0 + $0x50] sm:$0xff]  ;;  %3083 = vmatprep.subr.bf16.mxu1 %v3082_v22  ;;  %77 = vst [vmem:[#allocation2 + $0xe0] sm:$0x3] %v3480_v46 }
  0x30   :  { %2629 = vmatprep.mubr.msk.f32.mxu1 %vm111_vm1, %v106_v14  ;;  %v3090_v31 = vpack.c.bf16 %v554_v29, %v553_v28  ;;  %v97_v32 = vld [vmem:[%s4042_s0 + $0x58] sm:$0xff]  ;;  %v98_v33 = vld [vmem:[%s4042_s0 + $0x60] sm:$0xff]  ;;  %v99_v34 = vld [vmem:[%s4042_s0 + $0x68] sm:$0xff]  ;;  %78 = vst [vmem:[#allocation2 + $0x18] sm:$0x3] %v3480_v46 }
  0x31   :  { %2606 = vmatmul.mubr.msk.f32.gmra.mrb[4].mxu0 %vm111_vm1, %v91_v9  ;;  %v100_v35 = vld [vmem:[%s4042_s0 + $0x70] sm:$0xff]  ;;  %v101_v36 = vld [vmem:[%s4042_s0 + $0x78] sm:$0xff]  ;;  %v555_v37 = vld [vmem:[#allocation3 + $0xc0] sm:$0xff]  ;;  %79 = vst [vmem:[#allocation2 + $0x38] sm:$0x3] %v3480_v46 }
  0x32   :  { %2608 = vmatprep.mubr.msk.f32.mxu0 %vm111_vm1, %v92_v13  ;;  %3085 = vmatpush3.bf16.msra.mxu1 %v3082_v22  ;;  %v556_v38 = vld [vmem:[#allocation3 + $0xc8] sm:$0xff]  ;;  %v557_v40 = vld [vmem:[#allocation3 + $0xd0] sm:$0xff]  ;;  %v558_v41 = vld [vmem:[#allocation3 + $0xd8] sm:$0xff]  ;;  %80 = vst [vmem:[#allocation2 + $0x58] sm:$0x3] %v3480_v46 }
  0x33   :  { %2630 = vmatmul.mubr.msk.f32.gmra.mrb[4].mxu1 %vm111_vm1, %v107_v20  ;;  %3087 = vmatprep.subr.bf16.mxu1 %v3086_v27  ;;  %v3094_v39 = vpack.c.bf16 %v556_v38, %v555_v37  ;;  %v3098_v42 = vpack.c.bf16 %v558_v41, %v557_v40  ;;  %v559_v43 = vld [vmem:[#allocation3 + $0xe0] sm:$0xff]  ;;  %v560_v44 = vld [vmem:[#allocation3 + $0xe8] sm:$0xff]  ;;  %81 = vst [vmem:[#allocation2 + $0x78] sm:$0x3] %v3480_v46  ;;  %82 = vst [vmem:[#allocation2 + $0x98] sm:$0x3] %v3480_v46 }
  0x34   :  { %2632 = vmatprep.mubr.msk.f32.mxu1 %vm111_vm1, %v108_v21  ;;  %v3102_v45 = vpack.c.bf16 %v560_v44, %v559_v43  ;;  %83 = vst [vmem:[#allocation2 + $0xb8] sm:$0x3] %v3480_v46  ;;  %84 = vst [vmem:[#allocation2 + $0xd8] sm:$0x3] %v3480_v46  ;;  %v561_v47 = vld [vmem:[#allocation3 + $0xf0] sm:$0xff]  ;;  %v562_v48 = vld [vmem:[#allocation3 + $0xf8] sm:$0xff] }
  0x35   :  { %2609 = vmatmul.mubr.msk.f32.gmra.mrb[6].mxu0 %vm111_vm1, %v93_v18  ;;  %85 = vst [vmem:[#allocation2 + $0xf8] sm:$0x3] %v3480_v46  ;;  %v3106_v49 = vpack.c.bf16 %v562_v48, %v561_v47  ;;  %v507_v50 = vld [vmem:[#allocation3] sm:$0xff]  ;;  %v508_v51 = vld [vmem:[#allocation3 + $0x8] sm:$0xff]  ;;  %v510_v28 = vld [vmem:[#allocation3 + $0x18] sm:$0xff] }
  0x36   :  { %2611 = vmatprep.mubr.msk.f32.mxu0 %vm111_vm1, %v94_v19  ;;  %3089 = vmatpush3.bf16.msra.mxu1 %v3086_v27  ;;  %v3688_v52 = vpack.c.bf16 %v508_v51, %v507_v50  ;;  %v3694_v53 = vld [vmem:[%s4044_s2] ss:$0 sm:$0xff]  ;;  %v509_v27 = vld [vmem:[#allocation3 + $0x10] sm:$0xff]  ;;  %v512_v50 = vld [vmem:[#allocation3 + $0x28] sm:$0xff] }
  0x37   :  { %2633 = vmatmul.mubr.msk.f32.gmra.mrb[6].mxu1 %vm111_vm1, %v109_v26  ;;  %3091 = vmatprep.subr.bf16.mxu1 %v3090_v31  ;;  %v3699_v55 = vld [vmem:[%s4045_s3] ss:$0 sm:$0xff]  ;;  %v3114_v44 = vpack.c.bf16 %v510_v28, %v509_v27 }
  0x39   :  { %2612 = vmatmul.mubr.msk.f32.gmra.mrb[8].mxu0 %vm111_vm1, %v95_v25 }
  0x3a   :  { %2614 = vmatprep.mubr.msk.f32.mxu0 %vm111_vm1, %v96_v30  ;;  %3093 = vmatpush3.bf16.msra.mxu1 %v3090_v31 }
  0x3b   :  { %3095 = vmatprep.subr.bf16.mxu1 %v3094_v39 }
  0x3d   :  { %2615 = vmatmul.mubr.msk.f32.gmra.mrb[10].mxu0 %vm111_vm1, %v97_v32 }
  0x3e   :  { %2617 = vmatprep.mubr.msk.f32.mxu0 %vm111_vm1, %v98_v33  ;;  %3097 = vmatpush3.bf16.msra.mxu1 %v3094_v39 }
  0x3f   :  { %3099 = vmatprep.subr.bf16.mxu1 %v3098_v42 }
  0x41   :  { %2618 = vmatmul.mubr.msk.f32.gmra.mrb[12].mxu0 %vm111_vm1, %v99_v34 }
  0x42   :  { %2620 = vmatprep.mubr.msk.f32.mxu0 %vm111_vm1, %v100_v35  ;;  %3101 = vmatpush3.bf16.msra.mxu1 %v3098_v42 }
  0x43   :  { %3103 = vmatprep.subr.bf16.mxu1 %v3102_v45 }
  0x45   :  { %2621 = vmatmul.mubr.msk.f32.gmra.mrb[14].mxu0 %vm111_vm1, %v101_v36 }
  0x46   :  { %3105 = vmatpush3.bf16.msra.mxu1 %v3102_v45 }
  0x47   :  { %3107 = vmatprep.subr.bf16.mxu1 %v3106_v49 }
  0x4a   :  { %3109 = vmatpush3.bf16.msra.mxu1 %v3106_v49  ;;  %v511_v49 = vld [vmem:[#allocation3 + $0x20] sm:$0xff] }
  0x4b   :  { %3111 = vmatprep.subr.bf16.mxu1 %v3688_v52 }
  0xfc   :  { %v2601_v54 = vpop.f32.mrb[0].mxu0 }
  0xfd   :  { %v381_v56 = vmul.f32 %v2601_v54, %v3694_v53  ;;  %v254_v57 = vpop.f32.mrb[1].mxu0 }
  0xfe   :  { %v380_v58 = vmul.f32 %v3694_v53, %v254_v57  ;;  %v2625_v62 = vpop.f32.mrb[0].mxu1 }
  0xff   :  { %v3704_v59 = vadd.f32 %v3699_v55, %v381_v56  ;;  %v397_v2 = vmul.f32 %v2625_v62, %v3694_v53  ;;  %v334_v3 = vpop.f32.mrb[1].mxu1 }
 0x100   :  { %v3707_v60 = vadd.f32 %v3699_v55, %v380_v58  ;;  %v2604_v61 = vpop.f32.mrb[2].mxu0  ;;  %v396_v6 = vmul.f32 %v3694_v53, %v334_v3 }
 0x101   :  { %v436_v63 = vmax.f32 %v3704_v59, 0.0  ;;  %v383_v0 = vmul.f32 %v2604_v61, %v3694_v53  ;;  %v264_v1 = vpop.f32.mrb[3].mxu0  ;;  %v428_v8 = vadd.f32 %v3699_v55, %v397_v2 }
 0x102   :  { %v435_v4 = vmax.f32 %v3707_v60, 0.0  ;;  %v382_v5 = vmul.f32 %v3694_v53, %v264_v1  ;;  %v3725_v11 = vadd.f32 %v3699_v55, %v396_v6  ;;  %v2628_v12 = vpop.f32.mrb[2].mxu1 }
 0x103   :  { %460 = vst [vmem:[#allocation2 + $0xa] sm:$0xff] %v436_v63  ;;  %v3718_v7 = vadd.f32 %v3699_v55, %v383_v0  ;;  %v452_v16 = vmax.f32 %v428_v8, 0.0  ;;  %v399_v17 = vmul.f32 %v2628_v12, %v3694_v53  ;;  %v344_v18 = vpop.f32.mrb[3].mxu1 }
 0x104   :  { %459 = vst [vmem:[#allocation2 + $0x2] sm:$0xff] %v435_v4  ;;  %v413_v9 = vadd.f32 %v3699_v55, %v382_v5  ;;  %v2607_v10 = vpop.f32.mrb[4].mxu0  ;;  %v451_v21 = vmax.f32 %v3725_v11, 0.0  ;;  %v398_v22 = vmul.f32 %v3694_v53, %v344_v18  ;;  %v1364_v11 = vld [vmem:[#allocation6 + $0xc0] sm:$0xff] }
 0x105   :  { %v438_v13 = vmax.f32 %v3718_v7, 0.0  ;;  %v385_v14 = vmul.f32 %v2607_v10, %v3694_v53  ;;  %v274_v15 = vpop.f32.mrb[5].mxu0  ;;  %476 = vst [vmem:[#allocation2 + $0xb2] sm:$0x3f] %v452_v16  ;;  %v3737_v24 = vadd.f32 %v3699_v55, %v399_v17  ;;  %v514_v16 = vld [vmem:[#allocation3 + $0x38] sm:$0xff] }
 0x106   :  { %v437_v19 = vmax.f32 %v413_v9, 0.0  ;;  %v384_v20 = vmul.f32 %v3694_v53, %v274_v15  ;;  %475 = vst [vmem:[#allocation2 + $0xaa] sm:$0xff] %v451_v21  ;;  %v3745_v29 = vadd.f32 %v3699_v55, %v398_v22  ;;  %v2631_v30 = vpop.f32.mrb[4].mxu1  ;;  %v3118_v9 = vpack.c.bf16 %v512_v50, %v511_v49  ;;  %v513_v15 = vld [vmem:[#allocation3 + $0x30] sm:$0xff] }
 0x107   :  { %462 = vst [vmem:[#allocation2 + $0x22] sm:$0xff] %v438_v13  ;;  %v416_v23 = vadd.f32 %v3699_v55, %v385_v14  ;;  %v454_v34 = vmax.f32 %v3737_v24, 0.0  ;;  %v401_v35 = vmul.f32 %v2631_v30, %v3694_v53  ;;  %v354_v36 = vpop.f32.mrb[5].mxu1  ;;  %v1368_v24 = vld [vmem:[#allocation6 + $0xe0] sm:$0xff] }
 0x108   :  { %461 = vst [vmem:[#allocation2 + $0x12] sm:$0x3f] %v437_v19  ;;  %v3740_v25 = vadd.f32 %v3699_v55, %v384_v20  ;;  %v2610_v26 = vpop.f32.mrb[6].mxu0  ;;  %v453_v39 = vmax.f32 %v3745_v29, 0.0  ;;  %v400_v40 = vmul.f32 %v3694_v53, %v354_v36  ;;  %v515_v36 = vld [vmem:[#allocation3 + $0x40] sm:$0xff]  ;;  %v1366_v29 = vld [vmem:[#allocation6 + $0xd0] sm:$0xff] }
 0x109   :  { %v440_v31 = vmax.f32 %v416_v23, 0.0  ;;  %v387_v32 = vmul.f32 %v2610_v26, %v3694_v53  ;;  %v284_v33 = vpop.f32.mrb[7].mxu0  ;;  %478 = vst [vmem:[#allocation2 + $0xca] sm:$0xff] %v454_v34  ;;  %v3760_v45 = vadd.f32 %v3699_v55, %v401_v35 }
 0x10a   :  { %v439_v37 = vmax.f32 %v3740_v25, 0.0  ;;  %v386_v38 = vmul.f32 %v3694_v53, %v284_v33  ;;  %477 = vst [vmem:[#allocation2 + $0xc2] sm:$0xff] %v453_v39  ;;  %v431_v51 = vadd.f32 %v3699_v55, %v400_v40  ;;  %v2634_v54 = vpop.f32.mrb[6].mxu1 }
 0x10b   :  { %464 = vst [vmem:[#allocation2 + $0x32] sm:$0x3f] %v440_v31  ;;  %v3755_v41 = vadd.f32 %v3699_v55, %v387_v32  ;;  %v523_v42 = vld [vmem:[#allocation2 + $0x1] sm:$0xff]  ;;  %v524_v43 = vld [vmem:[#allocation2 + $0x9] sm:$0xff]  ;;  %v456_v61 = vmax.f32 %v3760_v45, 0.0  ;;  %v403_v62 = vmul.f32 %v2634_v54, %v3694_v53  ;;  %v364_v0 = vpop.f32.mrb[7].mxu1  ;;  %v3122_v32 = vpack.c.bf16 %v514_v16, %v513_v15 }
 0x10c   :  { %463 = vst [vmem:[#allocation2 + $0x2a] sm:$0xff] %v439_v37  ;;  %v3765_v47 = vadd.f32 %v3699_v55, %v386_v38  ;;  %v2613_v48 = vpop.f32.mrb[8].mxu0  ;;  %2667 = vmatprep.mubr.f32.mxu1 %v523_v42  ;;  %v455_v3 = vmax.f32 %v431_v51, 0.0  ;;  %v402_v5 = vmul.f32 %v3694_v53, %v364_v0  ;;  %v516_v38 = vld [vmem:[#allocation3 + $0x48] sm:$0xff]  ;;  %v518_v0 = vld [vmem:[#allocation3 + $0x58] sm:$0xff]  ;;  %v1370_v45 = vld [vmem:[#allocation6 + $0xf0] sm:$0xff] }
 0x10d   :  { %v442_v56 = vmax.f32 %v3755_v41, 0.0  ;;  %v389_v57 = vmul.f32 %v2613_v48, %v3694_v53  ;;  %v294_v58 = vpop.f32.mrb[9].mxu0  ;;  %2668 = vmatmul.mubr.f32.vlgmr.msra.gmra.mrb[8].mxu1 %v524_v43  ;;  %480 = vst [vmem:[#allocation2 + $0xe2] sm:$0xff] %v456_v61  ;;  %v434_v10 = vadd.f32 %v3699_v55, %v403_v62  ;;  %v3126_v54 = vpack.c.bf16 %v516_v38, %v515_v36  ;;  %v517_v62 = vld [vmem:[#allocation3 + $0x50] sm:$0xff] }
 0x10e   :  { %v441_v1 = vmax.f32 %v3765_v47, 0.0  ;;  %v388_v2 = vmul.f32 %v3694_v53, %v294_v58  ;;  %3113 = vmatpush3.bf16.msra.mxu1 %v3688_v52  ;;  %v526_v14 = vld [vmem:[#allocation2 + $0x21] sm:$0xff]  ;;  %479 = vst [vmem:[#allocation2 + $0xd2] sm:$0x3f] %v455_v3  ;;  %v3790_v17 = vadd.f32 %v3699_v55, %v402_v5  ;;  %v3130_v16 = vpack.c.bf16 %v518_v0, %v517_v62  ;;  %v1371_v47 = vld [vmem:[#allocation6 + $0xf8] sm:$0xff] }
 0x10f   :  { %466 = vst [vmem:[#allocation2 + $0x4a] sm:$0xff] %v442_v56  ;;  %v3781_v6 = vadd.f32 %v3699_v55, %v389_v57  ;;  %v525_v8 = vld [vmem:[#allocation2 + $0x11] sm:$0xff]  ;;  %3115 = vmatprep.subr.bf16.mxu1 %v3114_v44  ;;  %v458_v22 = vmax.f32 %v434_v10, 0.0  ;;  %v957_v0 = vld [vmem:[#allocation3 + $0x100] sm:$0xff] }
 0x110   :  { %465 = vst [vmem:[#allocation2 + $0x42] sm:$0xff] %v441_v1  ;;  %v419_v52 = vadd.f32 %v3699_v55, %v388_v2  ;;  %v2616_v12 = vpop.f32.mrb[10].mxu0  ;;  %2670 = vmatprep.mubr.f32.mxu1 %v525_v8  ;;  %v457_v27 = vmax.f32 %v3790_v17, 0.0  ;;  %v1356_v8 = vld [vmem:[#allocation6 + $0x80] sm:$0xff] }
 0x111   :  { %v444_v18 = vmax.f32 %v3781_v6, 0.0  ;;  %v391_v19 = vmul.f32 %v2616_v12, %v3694_v53  ;;  %v304_v20 = vpop.f32.mrb[11].mxu0  ;;  %2671 = vmatmul.mubr.f32.gmra.mrb[10].mxu1 %v526_v14  ;;  %482 = vst [vmem:[#allocation2 + $0xf2] sm:$0x3f] %v458_v22  ;;  %v519_v22 = vld [vmem:[#allocation3 + $0x60] sm:$0xff] }
 0x112   :  { %v443_v23 = vmax.f32 %v419_v52, 0.0  ;;  %v390_v26 = vmul.f32 %v3694_v53, %v304_v20  ;;  %3117 = vmatpush3.bf16.msra.mxu1 %v3114_v44  ;;  %481 = vst [vmem:[#allocation2 + $0xea] sm:$0xff] %v457_v27  ;;  %v3865_v17 = vld [vmem:[%s4047_s5] ss:$0 sm:$0xff] }
 0x113   :  { %468 = vst [vmem:[#allocation2 + $0x62] sm:$0xff] %v444_v18  ;;  %v422_v28 = vadd.f32 %v3699_v55, %v391_v19  ;;  %v527_v30 = vld [vmem:[#allocation2 + $0x29] sm:$0xff]  ;;  %v528_v31 = vld [vmem:[#allocation2 + $0x31] sm:$0xff]  ;;  %3119 = vmatprep.subr.bf16.mxu1 %v3118_v9 }
 0x114   :  { %467 = vst [vmem:[#allocation2 + $0x52] sm:$0x3f] %v443_v23  ;;  %v3800_v33 = vadd.f32 %v3699_v55, %v390_v26  ;;  %v2619_v35 = vpop.f32.mrb[12].mxu0  ;;  %2673 = vmatprep.mubr.f32.mxu1 %v527_v30  ;;  %v1358_v26 = vld [vmem:[#allocation6 + $0x90] sm:$0xff] }
 0x115   :  { %v446_v40 = vmax.f32 %v422_v28, 0.0  ;;  %v393_v42 = vmul.f32 %v2619_v35, %v3694_v53  ;;  %v314_v43 = vpop.f32.mrb[13].mxu0  ;;  %2674 = vmatmul.mubr.f32.gmra.mrb[12].mxu1 %v528_v31  ;;  %v1359_v28 = vld [vmem:[#allocation6 + $0x98] sm:$0xff]  ;;  %v1361_v35 = vld [vmem:[#allocation6 + $0xa8] sm:$0xff] }
 0x116   :  { %v445_v44 = vmax.f32 %v3800_v33, 0.0  ;;  %v392_v48 = vmul.f32 %v3694_v53, %v314_v43  ;;  %3121 = vmatpush3.bf16.msra.mxu1 %v3118_v9  ;;  %v1357_v9 = vld [vmem:[#allocation6 + $0x88] sm:$0xff]  ;;  %v3178_v31 = vpack.c.bf16 %v1359_v28, %v1358_v26  ;;  %v522_v43 = vld [vmem:[#allocation3 + $0x78] sm:$0xff]  ;;  %v959_v26 = vld [vmem:[#allocation3 + $0x110] sm:$0xff] }
 0x117   :  { %470 = vst [vmem:[#allocation2 + $0x72] sm:$0x3f] %v446_v40  ;;  %v3808_v49 = vadd.f32 %v3699_v55, %v393_v42  ;;  %v529_v50 = vld [vmem:[#allocation2 + $0x41] sm:$0xff]  ;;  %v530_v51 = vld [vmem:[#allocation2 + $0x49] sm:$0xff]  ;;  %3123 = vmatprep.subr.bf16.mxu1 %v3122_v32  ;;  %v3174_v12 = vpack.c.bf16 %v1357_v9, %v1356_v8  ;;  %v960_v28 = vld [vmem:[#allocation3 + $0x118] sm:$0xff] }
 0x118   :  { %469 = vst [vmem:[#allocation2 + $0x6a] sm:$0xff] %v445_v44  ;;  %v3813_v57 = vadd.f32 %v3699_v55, %v392_v48  ;;  %v2622_v58 = vpop.f32.mrb[14].mxu0  ;;  %2676 = vmatprep.mubr.f32.mxu1 %v529_v50  ;;  %v521_v40 = vld [vmem:[#allocation3 + $0x70] sm:$0xff]  ;;  %v1363_v50 = vld [vmem:[#allocation6 + $0xb8] sm:$0xff] }
 0x119   :  { %v448_v2 = vmax.f32 %v3808_v49, 0.0  ;;  %v395_v3 = vmul.f32 %v2622_v58, %v3694_v53  ;;  %v324_v5 = vpop.f32.mrb[15].mxu0  ;;  %2677 = vmatmul.mubr.f32.gmra.mrb[14].mxu1 %v530_v51  ;;  %3175 = vmatprep.subr.bf16.mxu0 %v3174_v12  ;;  %v1362_v48 = vld [vmem:[#allocation6 + $0xb0] sm:$0xff]  ;;  %v3138_v62 = vpack.c.bf16 %v522_v43, %v521_v40  ;;  %v486_v40 = vld [vmem:[#allocation2 + $0x20] sm:$0xff]  ;;  %v964_v43 = vld [vmem:[#allocation3 + $0x138] sm:$0xff] }
 0x11a   :  { %v447_v10 = vmax.f32 %v3813_v57, 0.0  ;;  %v394_v52 = vmul.f32 %v3694_v53, %v324_v5  ;;  %3125 = vmatpush3.bf16.msra.mxu1 %v3122_v32  ;;  %v532_v20 = vld [vmem:[#allocation2 + $0x61] sm:$0xff]  ;;  %3177 = vmatpush3.bf16.msra.mxu0 %v3174_v12  ;;  %v3186_v51 = vpack.c.bf16 %v1363_v50, %v1362_v48  ;;  %v953_v7 = vld [vmem:[#allocation2 + $0xd2] sm:$0xff] }
 0x11b   :  { %472 = vst [vmem:[#allocation2 + $0x8a] sm:$0xff] %v448_v2  ;;  %v3822_v14 = vadd.f32 %v3699_v55, %v395_v3  ;;  %v531_v15 = vld [vmem:[#allocation2 + $0x51] sm:$0xff]  ;;  %3127 = vmatprep.subr.bf16.mxu1 %v3126_v54  ;;  %v520_v53 = vld [vmem:[#allocation3 + $0x68] sm:$0xff]  ;;  %v1360_v32 = vld [vmem:[#allocation6 + $0xa0] sm:$0xff]  ;;  %3179 = vmatprep.subr.bf16.mxu0 %v3178_v31 }
 0x11c   :  { %471 = vst [vmem:[#allocation2 + $0x82] sm:$0xff] %v447_v10  ;;  %v425_v19 = vadd.f32 %v3699_v55, %v394_v52  ;;  %2679 = vmatprep.mubr.f32.mxu1 %v531_v15  ;;  %v3134_v38 = vpack.c.bf16 %v520_v53, %v519_v22  ;;  %v3182_v42 = vpack.c.bf16 %v1361_v35, %v1360_v32  ;;  %v958_v3 = vld [vmem:[#allocation3 + $0x108] sm:$0xff]  ;;  %v540_v15 = vld [vmem:[#allocation2 + $0xb1] sm:$0xff]  ;;  %v961_v35 = vld [vmem:[#allocation3 + $0x120] sm:$0xff] }
 0x11d   :  { %v450_v23 = vmax.f32 %v3822_v14, 0.0  ;;  %2680 = vmatmul.mubr.f32.gmra.mrb[16].mxu1 %v532_v20  ;;  %v3142_v8 = vpack.c.bf16 %v958_v3, %v957_v0  ;;  %v541_v12 = vld [vmem:[#allocation2 + $0xc1] sm:$0xff]  ;;  %v545_v22 = vld [vmem:[#allocation2 + $0xe9] sm:$0xff]  ;;  %v546_v53 = vld [vmem:[#allocation2 + $0xf1] sm:$0xff] }
 0x11e   :  { %v449_v30 = vmax.f32 %v425_v19, 0.0  ;;  %3129 = vmatpush3.bf16.msra.mxu1 %v3126_v54  ;;  %3181 = vmatpush3.bf16.msra.mxu0 %v3178_v31  ;;  %v543_v19 = vld [vmem:[#allocation2 + $0xd1] sm:$0xff]  ;;  %v544_v20 = vld [vmem:[#allocation2 + $0xe1] sm:$0xff]  ;;  %v3146_v31 = vpack.c.bf16 %v960_v28, %v959_v26 }
 0x11f   :  { %474 = vst [vmem:[#allocation2 + $0xa2] sm:$0xff] %v450_v23  ;;  %v533_v55 = vld [vmem:[#allocation2 + $0x69] sm:$0xff]  ;;  %v534_v36 = vld [vmem:[#allocation2 + $0x71] sm:$0xff]  ;;  %3131 = vmatprep.subr.bf16.mxu1 %v3130_v16  ;;  %3183 = vmatprep.subr.bf16.mxu0 %v3182_v42 }
 0x120   :  { %473 = vst [vmem:[#allocation2 + $0x92] sm:$0x3f] %v449_v30  ;;  %2682 = vmatprep.mubr.f32.mxu1 %v533_v55  ;;  %v483_v30 = vld [vmem:[#allocation2] sm:$0xff]  ;;  %v484_v32 = vld [vmem:[#allocation2 + $0x8] sm:$0xff]  ;;  %v972_v26 = vld [vmem:[#allocation3 + $0x178] sm:$0xff] }
 0x121   :  { %2683 = vmatmul.mubr.f32.gmra.mrb[18].mxu1 %v534_v36  ;;  %v962_v55 = vld [vmem:[#allocation3 + $0x128] sm:$0xff]  ;;  %v485_v36 = vld [vmem:[#allocation2 + $0x10] sm:$0xff] }
 0x122   :  { %3133 = vmatpush3.bf16.msra.mxu1 %v3130_v16  ;;  %3185 = vmatpush3.bf16.msra.mxu0 %v3182_v42  ;;  %v542_v16 = vld [vmem:[#allocation2 + $0xc9] sm:$0xff]  ;;  %v941_v60 = vld [vmem:[#allocation2 + $0x52] sm:$0xff] }
 0x123   :  { %v535_v54 = vld [vmem:[#allocation2 + $0x81] sm:$0xff]  ;;  %v536_v58 = vld [vmem:[#allocation2 + $0x89] sm:$0xff]  ;;  %3135 = vmatprep.subr.bf16.mxu1 %v3134_v38  ;;  %3187 = vmatprep.subr.bf16.mxu0 %v3186_v51  ;;  %v944_v59 = vld [vmem:[#allocation2 + $0x72] sm:$0xff] }
 0x124   :  { %2685 = vmatprep.mubr.f32.mxu1 %v535_v54  ;;  %v963_v42 = vld [vmem:[#allocation3 + $0x130] sm:$0xff]  ;;  %v487_v48 = vld [vmem:[#allocation2 + $0x28] sm:$0xff]  ;;  %v965_v54 = vld [vmem:[#allocation3 + $0x140] sm:$0xff] }
 0x125   :  { %2686 = vmatmul.mubr.f32.gmra.mrb[20].mxu1 %v536_v58  ;;  %v3154_v50 = vpack.c.bf16 %v964_v43, %v963_v42  ;;  %v966_v58 = vld [vmem:[#allocation3 + $0x148] sm:$0xff]  ;;  %v495_v28 = vld [vmem:[#allocation2 + $0x80] sm:$0xff]  ;;  %v503_v42 = vld [vmem:[#allocation2 + $0xd0] sm:$0xff] }
 0x126   :  { %3137 = vmatpush3.bf16.msra.mxu1 %v3134_v38  ;;  %v538_v9 = vld [vmem:[#allocation2 + $0xa1] sm:$0xff]  ;;  %v539_v52 = vld [vmem:[#allocation2 + $0xa9] sm:$0xff]  ;;  %3189 = vmatpush3.bf16.msra.mxu0 %v3186_v51  ;;  %v3150_v38 = vpack.c.bf16 %v962_v55, %v961_v35  ;;  %v3158_v0 = vpack.c.bf16 %v966_v58, %v965_v54  ;;  %v938_v54 = vld [vmem:[#allocation2 + $0x32] sm:$0xff] }
 0x127   :  { %v537_v5 = vld [vmem:[#allocation2 + $0x91] sm:$0xff]  ;;  %3139 = vmatprep.subr.bf16.mxu1 %v3138_v62  ;;  %v490_v3 = vld [vmem:[#allocation2 + $0x48] sm:$0xff]  ;;  %v498_v35 = vld [vmem:[#allocation2 + $0xa0] sm:$0xff] }
 0x128   :  { %2688 = vmatprep.mubr.f32.mxu1 %v537_v5  ;;  %v488_v51 = vld [vmem:[#allocation2 + $0x30] sm:$0xff]  ;;  %v499_v55 = vld [vmem:[#allocation2 + $0xa8] sm:$0xff]  ;;  %v504_v43 = vld [vmem:[#allocation2 + $0xe0] sm:$0xff] }
 0x129   :  { %2689 = vmatmul.mubr.f32.gmra.mrb[22].mxu1 %v538_v9  ;;  %v967_v5 = vld [vmem:[#allocation3 + $0x150] sm:$0xff] }
 0x12a   :  { %2691 = vmatprep.mubr.f32.mxu1 %v539_v52  ;;  %3141 = vmatpush3.bf16.msra.mxu1 %v3138_v62  ;;  %v489_v62 = vld [vmem:[#allocation2 + $0x40] sm:$0xff]  ;;  %v491_v9 = vld [vmem:[#allocation2 + $0x50] sm:$0xff] }
 0x12b   :  { %3143 = vmatprep.subr.bf16.mxu1 %v3142_v8  ;;  %v1318_v14 = vld [vmem:[#allocation6 + $0x10] sm:$0xff] }
 0x12d   :  { %2692 = vmatmul.mubr.f32.gmra.mrb[24].mxu1 %v540_v15  ;;  %v969_v15 = vld [vmem:[#allocation3 + $0x160] sm:$0xff] }
 0x12e   :  { %2694 = vmatprep.mubr.f32.mxu1 %v541_v12  ;;  %v492_v12 = vld [vmem:[#allocation2 + $0x60] sm:$0xff] }
 0x131   :  { %2695 = vmatmul.mubr.f32.gmra.mrb[26].mxu1 %v542_v16  ;;  %v970_v16 = vld [vmem:[#allocation3 + $0x168] sm:$0xff] }
 0x132   :  { %2697 = vmatprep.mubr.f32.mxu1 %v543_v19  ;;  %v493_v19 = vld [vmem:[#allocation2 + $0x68] sm:$0xff] }
 0x135   :  { %2698 = vmatmul.mubr.f32.gmra.mrb[28].mxu1 %v544_v20  ;;  %v3166_v20 = vpack.c.bf16 %v970_v16, %v969_v15  ;;  %v1320_v15 = vld [vmem:[#allocation6 + $0x20] sm:$0xff]  ;;  %v1321_v16 = vld [vmem:[#allocation6 + $0x28] sm:$0xff] }
 0x136   :  { %2700 = vmatprep.mubr.f32.mxu1 %v545_v22  ;;  %v494_v22 = vld [vmem:[#allocation2 + $0x70] sm:$0xff] }
 0x139   :  { %2701 = vmatmul.mubr.f32.gmra.mrb[30].mxu1 %v546_v53  ;;  %v971_v53 = vld [vmem:[#allocation3 + $0x170] sm:$0xff] }
 0x13a   :  { %2735 = vmatprep.mubr.f32.mxu1 %v483_v30  ;;  %v3170_v30 = vpack.c.bf16 %v972_v26, %v971_v53 }
 0x13d   :  { %2736 = vmatmul.mubr.f32.vlgmr.msra.gmra.mrb[8].mxu1 %v484_v32  ;;  %v497_v32 = vld [vmem:[#allocation2 + $0x90] sm:$0xff] }
 0x13e   :  { %3145 = vmatpush3.bf16.msra.mxu1 %v3142_v8  ;;  %2738 = vmatprep.mubr.f32.mxu1 %v485_v36  ;;  %v968_v8 = vld [vmem:[#allocation3 + $0x158] sm:$0xff]  ;;  %v500_v36 = vld [vmem:[#allocation2 + $0xb0] sm:$0xff] }
 0x13f   :  { %3147 = vmatprep.subr.bf16.mxu1 %v3146_v31  ;;  %v3162_v52 = vpack.c.bf16 %v968_v8, %v967_v5 }
 0x141   :  { %2739 = vmatmul.mubr.f32.gmra.mrb[10].mxu1 %v486_v40  ;;  %v502_v40 = vld [vmem:[#allocation2 + $0xc8] sm:$0xff] }
 0x142   :  { %2741 = vmatprep.mubr.f32.mxu1 %v487_v48  ;;  %3149 = vmatpush3.bf16.msra.mxu1 %v3146_v31  ;;  %v496_v31 = vld [vmem:[#allocation2 + $0x88] sm:$0xff] }
 0x143   :  { %3151 = vmatprep.subr.bf16.mxu1 %v3150_v38  ;;  %v505_v48 = vld [vmem:[#allocation2 + $0xe8] sm:$0xff] }
 0x145   :  { %2742 = vmatmul.mubr.f32.gmra.mrb[12].mxu1 %v488_v51  ;;  %v935_v51 = vld [vmem:[#allocation2 + $0x12] sm:$0xff] }
 0x146   :  { %2744 = vmatprep.mubr.f32.mxu1 %v489_v62  ;;  %3153 = vmatpush3.bf16.msra.mxu1 %v3150_v38  ;;  %v501_v38 = vld [vmem:[#allocation2 + $0xc0] sm:$0xff] }
 0x147   :  { %3155 = vmatprep.subr.bf16.mxu1 %v3154_v50 }
 0x149   :  { %2745 = vmatmul.mubr.f32.gmra.mrb[14].mxu1 %v490_v3 }
 0x14a   :  { %2747 = vmatprep.mubr.f32.mxu1 %v491_v9  ;;  %3157 = vmatpush3.bf16.msra.mxu1 %v3154_v50  ;;  %v506_v50 = vld [vmem:[#allocation2 + $0xf0] sm:$0xff] }
 0x14b   :  { %3159 = vmatprep.subr.bf16.mxu1 %v3158_v0 }
 0x14d   :  { %2748 = vmatmul.mubr.f32.gmra.mrb[16].mxu1 %v492_v12 }
 0x14e   :  { %2750 = vmatprep.mubr.f32.mxu1 %v493_v19  ;;  %3161 = vmatpush3.bf16.msra.mxu1 %v3158_v0 }
 0x14f   :  { %3163 = vmatprep.subr.bf16.mxu1 %v3162_v52 }
 0x151   :  { %2751 = vmatmul.mubr.f32.gmra.mrb[18].mxu1 %v494_v22 }
 0x152   :  { %2753 = vmatprep.mubr.f32.mxu1 %v495_v28  ;;  %3165 = vmatpush3.bf16.msra.mxu1 %v3162_v52 }
 0x153   :  { %3167 = vmatprep.subr.bf16.mxu1 %v3166_v20 }
 0x155   :  { %2754 = vmatmul.mubr.f32.gmra.mrb[20].mxu1 %v496_v31 }
 0x156   :  { %2756 = vmatprep.mubr.f32.mxu1 %v497_v32  ;;  %3169 = vmatpush3.bf16.msra.mxu1 %v3166_v20 }
 0x157   :  { %3171 = vmatprep.subr.bf16.mxu1 %v3170_v30 }
 0x159   :  { %2757 = vmatmul.mubr.f32.gmra.mrb[22].mxu1 %v498_v35  ;;  %v1322_v35 = vld [vmem:[#allocation6 + $0x30] sm:$0xff] }
 0x15a   :  { %2759 = vmatprep.mubr.f32.mxu1 %v499_v55  ;;  %3173 = vmatpush3.bf16.msra.mxu1 %v3170_v30  ;;  %v3214_v30 = vpack.c.bf16 %v1321_v16, %v1320_v15  ;;  %v1323_v55 = vld [vmem:[#allocation6 + $0x38] sm:$0xff] }
 0x15d   :  { %2760 = vmatmul.mubr.f32.gmra.mrb[24].mxu1 %v500_v36 }
 0x15e   :  { %2762 = vmatprep.mubr.f32.mxu1 %v501_v38 }
 0x161   :  { %2763 = vmatmul.mubr.f32.gmra.mrb[26].mxu1 %v502_v40 }
 0x162   :  { %2765 = vmatprep.mubr.f32.mxu1 %v503_v42 }
 0x165   :  { %2766 = vmatmul.mubr.f32.gmra.mrb[28].mxu1 %v504_v43 }
 0x166   :  { %2768 = vmatprep.mubr.f32.mxu1 %v505_v48 }
 0x169   :  { %2769 = vmatmul.mubr.f32.gmra.mrb[30].mxu1 %v506_v50  ;;  %v3218_v50 = vpack.c.bf16 %v1323_v55, %v1322_v35 }
 0x16a   :  { %2803 = vmatprep.mubr.f32.mxu1 %v435_v4  ;;  %v950_v4 = vld [vmem:[#allocation2 + $0xb2] sm:$0xff] }
 0x16d   :  { %2804 = vmatmul.mubr.f32.vlgmr.msra.gmra.mrb[8].mxu1 %v436_v63  ;;  %v947_v63 = vld [vmem:[#allocation2 + $0x92] sm:$0xff] }
 0x16e   :  { %2806 = vmatprep.mubr.f32.mxu1 %v935_v51 }
 0x171   :  { %2807 = vmatmul.mubr.f32.gmra.mrb[10].mxu1 %v438_v13  ;;  %v956_v13 = vld [vmem:[#allocation2 + $0xf2] sm:$0xff] }
 0x172   :  { %2809 = vmatprep.mubr.f32.mxu1 %v439_v37  ;;  %v1367_v37 = vld [vmem:[#allocation6 + $0xd8] sm:$0xff] }
 0x175   :  { %2810 = vmatmul.mubr.f32.gmra.mrb[12].mxu1 %v938_v54 }
 0x176   :  { %2812 = vmatprep.mubr.f32.mxu1 %v441_v1  ;;  %v1317_v1 = vld [vmem:[#allocation6 + $0x8] sm:$0xff] }
 0x179   :  { %2813 = vmatmul.mubr.f32.gmra.mrb[14].mxu1 %v442_v56  ;;  %v3202_v56 = vpack.c.bf16 %v1371_v47, %v1370_v45 }
 0x17a   :  { %2815 = vmatprep.mubr.f32.mxu1 %v941_v60  ;;  %v1324_v60 = vld [vmem:[#allocation6 + $0x40] sm:$0xff] }
 0x17d   :  { %2816 = vmatmul.mubr.f32.gmra.mrb[16].mxu1 %v444_v18 }
 0x17e   :  { %2818 = vmatprep.mubr.f32.mxu1 %v445_v44 }
 0x181   :  { %2819 = vmatmul.mubr.f32.gmra.mrb[18].mxu1 %v944_v59  ;;  %v1325_v59 = vld [vmem:[#allocation6 + $0x48] sm:$0xff] }
 0x182   :  { %2821 = vmatprep.mubr.f32.mxu1 %v447_v10 }
 0x185   :  { %2822 = vmatmul.mubr.f32.gmra.mrb[20].mxu1 %v448_v2 }
 0x186   :  { %2824 = vmatprep.mubr.f32.mxu1 %v947_v63 }
 0x189   :  { %2825 = vmatmul.mubr.f32.gmra.mrb[22].mxu1 %v450_v23  ;;  %v1319_v23 = vld [vmem:[#allocation6 + $0x18] sm:$0xff] }
 0x18a   :  { %2827 = vmatprep.mubr.f32.mxu1 %v451_v21  ;;  %v1365_v21 = vld [vmem:[#allocation6 + $0xc8] sm:$0xff]  ;;  %v3210_v9 = vpack.c.bf16 %v1319_v23, %v1318_v14 }
 0x18b   :  { %v3190_v25 = vpack.c.bf16 %v1365_v21, %v1364_v11 }
 0x18d   :  { %2828 = vmatmul.mubr.f32.gmra.mrb[24].mxu1 %v950_v4  ;;  %3191 = vmatprep.subr.bf16.mxu0 %v3190_v25 }
 0x18e   :  { %2830 = vmatprep.mubr.f32.mxu1 %v453_v39  ;;  %3193 = vmatpush3.bf16.msra.mxu0 %v3190_v25  ;;  %v3194_v39 = vpack.c.bf16 %v1367_v37, %v1366_v29  ;;  %v3222_v25 = vpack.c.bf16 %v1325_v59, %v1324_v60 }
 0x190   :  { %3195 = vmatprep.subr.bf16.mxu0 %v3194_v39 }
 0x191   :  { %2831 = vmatmul.mubr.f32.gmra.mrb[26].mxu1 %v454_v34  ;;  %v1369_v34 = vld [vmem:[#allocation6 + $0xe8] sm:$0xff] }
 0x192   :  { %2833 = vmatprep.mubr.f32.mxu1 %v953_v7  ;;  %3197 = vmatpush3.bf16.msra.mxu0 %v3194_v39  ;;  %v3198_v41 = vpack.c.bf16 %v1369_v34, %v1368_v24  ;;  %v1326_v39 = vld [vmem:[#allocation6 + $0x50] sm:$0xff]  ;;  %v1327_v24 = vld [vmem:[#allocation6 + $0x58] sm:$0xff] }
 0x194   :  { %3199 = vmatprep.subr.bf16.mxu0 %v3198_v41 }
 0x195   :  { %2834 = vmatmul.mubr.f32.gmra.mrb[28].mxu1 %v456_v61  ;;  %v1316_v61 = vld [vmem:[#allocation6] sm:$0xff] }
 0x196   :  { %2836 = vmatprep.mubr.f32.mxu1 %v457_v27  ;;  %3201 = vmatpush3.bf16.msra.mxu0 %v3198_v41  ;;  %v3206_v6 = vpack.c.bf16 %v1317_v1, %v1316_v61  ;;  %v3870_v27 = vld [vmem:[%s4048_s6] ss:$0 sm:$0xff]  ;;  %v3226_v1 = vpack.c.bf16 %v1327_v24, %v1326_v39 }
 0x197   :  { %3203 = vmatprep.subr.bf16.mxu0 %v3202_v56 }
 0x199   :  { %2837 = vmatmul.mubr.f32.gmra.mrb[30].mxu1 %v956_v13 }
 0x19a   :  { %3205 = vmatpush3.bf16.msra.mxu0 %v3202_v56  ;;  %3075 = vmatprep.mubr.msk.f32.mxu1 %vm3482_vm2, %v3480_v46 }
 0x19b   :  { %3207 = vmatprep.subr.bf16.mxu0 %v3206_v6 }
 0x240   :  { %v2805_v18 = vpop.f32.mrb[8].mxu1 }
 0x241   :  { %v1190_v33 = vmul.f32 %v2805_v18, %v3865_v17  ;;  %v1039_v44 = vpop.f32.mrb[9].mxu1 }
 0x242   :  { %v1189_v49 = vmul.f32 %v3865_v17, %v1039_v44  ;;  %v1329_v44 = vld [vmem:[#allocation6 + $0x68] sm:$0xff] }
 0x243   :  { %v1221_v57 = vadd.f32 %v3870_v27, %v1190_v33  ;;  %v1328_v33 = vld [vmem:[#allocation6 + $0x60] sm:$0xff] }
 0x244   :  { %v1220_v2 = vadd.f32 %v3870_v27, %v1189_v49  ;;  %v2808_v10 = vpop.f32.mrb[10].mxu1 }
 0x245   :  { %v1245_v58 = vmax.f32 %v1221_v57, 0.0  ;;  %v1192_v62 = vmul.f32 %v2808_v10, %v3865_v17  ;;  %v1049_v0 = vpop.f32.mrb[11].mxu1 }
 0x246   :  { %v1244_v3 = vmax.f32 %v1220_v2, 0.0  ;;  %v1191_v5 = vmul.f32 %v3865_v17, %v1049_v0 }
 0x247   :  { %1269 = vst [vmem:[#allocation2 + $0x9] sm:$0xff] %v1245_v58  ;;  %v1223_v8 = vadd.f32 %v3870_v27, %v1192_v62 }
 0x248   :  { %1268 = vst [vmem:[#allocation2 + $0x1] sm:$0xff] %v1244_v3  ;;  %v1222_v52 = vadd.f32 %v3870_v27, %v1191_v5  ;;  %v2811_v12 = vpop.f32.mrb[12].mxu1  ;;  %2871 = vmatprep.mubr.f32.mxu0 %v1244_v3  ;;  %v1330_v3 = vld [vmem:[#allocation6 + $0x70] sm:$0xff]  ;;  %v1331_v5 = vld [vmem:[#allocation6 + $0x78] sm:$0xff] }
 0x249   :  { %v1247_v19 = vmax.f32 %v1223_v8, 0.0  ;;  %v1194_v20 = vmul.f32 %v2811_v12, %v3865_v17  ;;  %v1059_v22 = vpop.f32.mrb[13].mxu1  ;;  %2872 = vmatmul.mubr.f32.vlgmr.msra.gmra.mrb[16].mxu0 %v1245_v58  ;;  %v3230_v58 = vpack.c.bf16 %v1329_v44, %v1328_v33  ;;  %v1770_v44 = vld [vmem:[#allocation6 + $0x120] sm:$0xff] }
 0x24a   :  { %v1246_v53 = vmax.f32 %v1222_v52, 0.0  ;;  %v1193_v26 = vmul.f32 %v3865_v17, %v1059_v22  ;;  %3209 = vmatpush3.bf16.msra.mxu0 %v3206_v6 }
 0x24b   :  { %1271 = vst [vmem:[#allocation2 + $0x21] sm:$0xff] %v1247_v19  ;;  %v1225_v28 = vadd.f32 %v3870_v27, %v1194_v20  ;;  %3211 = vmatprep.subr.bf16.mxu0 %v3210_v9 }
 0x24c   :  { %1270 = vst [vmem:[#allocation2 + $0x11] sm:$0xff] %v1246_v53  ;;  %v1224_v31 = vadd.f32 %v3870_v27, %v1193_v26  ;;  %v2814_v32 = vpop.f32.mrb[14].mxu1  ;;  %2874 = vmatprep.mubr.f32.mxu0 %v1246_v53  ;;  %v1766_v53 = vld [vmem:[#allocation6 + $0x100] sm:$0xff]  ;;  %v1767_v26 = vld [vmem:[#allocation6 + $0x108] sm:$0xff] }
 0x24d   :  { %v1249_v36 = vmax.f32 %v1225_v28, 0.0  ;;  %v1196_v38 = vmul.f32 %v2814_v32, %v3865_v17  ;;  %v1069_v40 = vpop.f32.mrb[15].mxu1  ;;  %2875 = vmatmul.mubr.f32.gmra.mrb[18].mxu0 %v1247_v19  ;;  %v3234_v19 = vpack.c.bf16 %v1331_v5, %v1330_v3  ;;  %v1775_v3 = vld [vmem:[#allocation6 + $0x148] sm:$0xff] }
 0x24e   :  { %v1248_v42 = vmax.f32 %v1224_v31, 0.0  ;;  %v1195_v43 = vmul.f32 %v3865_v17, %v1069_v40  ;;  %3213 = vmatpush3.bf16.msra.mxu0 %v3210_v9 }
 0x24f   :  { %1273 = vst [vmem:[#allocation2 + $0x31] sm:$0xff] %v1249_v36  ;;  %v1227_v48 = vadd.f32 %v3870_v27, %v1196_v38  ;;  %3215 = vmatprep.subr.bf16.mxu0 %v3214_v30 }
 0x250   :  { %1272 = vst [vmem:[#allocation2 + $0x29] sm:$0xff] %v1248_v42  ;;  %v1226_v51 = vadd.f32 %v3870_v27, %v1195_v43  ;;  %v2817_v54 = vpop.f32.mrb[16].mxu1  ;;  %2877 = vmatprep.mubr.f32.mxu0 %v1248_v42 }
 0x251   :  { %v1251_v63 = vmax.f32 %v1227_v48, 0.0  ;;  %v1198_v4 = vmul.f32 %v2817_v54, %v3865_v17  ;;  %v1079_v7 = vpop.f32.mrb[17].mxu1  ;;  %2878 = vmatmul.mubr.f32.gmra.mrb[20].mxu0 %v1249_v36  ;;  %v3238_v36 = vpack.c.bf16 %v1767_v26, %v1766_v53 }
 0x252   :  { %v1250_v13 = vmax.f32 %v1226_v51, 0.0  ;;  %v1197_v11 = vmul.f32 %v3865_v17, %v1079_v7  ;;  %3217 = vmatpush3.bf16.msra.mxu0 %v3214_v30 }
 0x253   :  { %1275 = vst [vmem:[#allocation2 + $0x49] sm:$0xff] %v1251_v63  ;;  %v1229_v21 = vadd.f32 %v3870_v27, %v1198_v4  ;;  %3219 = vmatprep.subr.bf16.mxu0 %v3218_v50 }
 0x254   :  { %1274 = vst [vmem:[#allocation2 + $0x41] sm:$0xff] %v1250_v13  ;;  %v1228_v29 = vadd.f32 %v3870_v27, %v1197_v11  ;;  %v2820_v37 = vpop.f32.mrb[18].mxu1  ;;  %2880 = vmatprep.mubr.f32.mxu0 %v1250_v13 }
 0x255   :  { %v1253_v34 = vmax.f32 %v1229_v21, 0.0  ;;  %v1200_v41 = vmul.f32 %v2820_v37, %v3865_v17  ;;  %v1089_v45 = vpop.f32.mrb[19].mxu1  ;;  %2881 = vmatmul.mubr.f32.gmra.mrb[22].mxu0 %v1251_v63 }
 0x256   :  { %v1252_v47 = vmax.f32 %v1228_v29, 0.0  ;;  %v1199_v56 = vmul.f32 %v3865_v17, %v1089_v45  ;;  %3221 = vmatpush3.bf16.msra.mxu0 %v3218_v50 }
 0x257   :  { %1277 = vst [vmem:[#allocation2 + $0x61] sm:$0xff] %v1253_v34  ;;  %v1231_v61 = vadd.f32 %v3870_v27, %v1200_v41  ;;  %3223 = vmatprep.subr.bf16.mxu0 %v3222_v25 }
 0x258   :  { %1276 = vst [vmem:[#allocation2 + $0x51] sm:$0xff] %v1252_v47  ;;  %v1230_v6 = vadd.f32 %v3870_v27, %v1199_v56  ;;  %v2823_v18 = vpop.f32.mrb[20].mxu1  ;;  %2883 = vmatprep.mubr.f32.mxu0 %v1252_v47 }
 0x259   :  { %v1255_v49 = vmax.f32 %v1231_v61, 0.0  ;;  %v1202_v57 = vmul.f32 %v2823_v18, %v3865_v17  ;;  %v1099_v2 = vpop.f32.mrb[21].mxu1  ;;  %2884 = vmatmul.mubr.f32.gmra.mrb[24].mxu0 %v1253_v34  ;;  %v1292_v18 = vld [vmem:[#allocation2] sm:$0xff] }
 0x25a   :  { %v1254_v10 = vmax.f32 %v1230_v6, 0.0  ;;  %v1201_v14 = vmul.f32 %v3865_v17, %v1099_v2  ;;  %3225 = vmatpush3.bf16.msra.mxu0 %v3222_v25  ;;  %v1769_v6 = vld [vmem:[#allocation6 + $0x118] sm:$0xff]  ;;  %v1295_v2 = vld [vmem:[#allocation2 + $0x20] sm:$0xff] }
 0x25b   :  { %1279 = vst [vmem:[#allocation2 + $0x71] sm:$0xff] %v1255_v49  ;;  %v1233_v23 = vadd.f32 %v3870_v27, %v1202_v57  ;;  %3227 = vmatprep.subr.bf16.mxu0 %v3226_v1  ;;  %v1294_v57 = vld [vmem:[#allocation2 + $0x10] sm:$0xff]  ;;  %v1298_v5 = vld [vmem:[#allocation2 + $0x40] sm:$0xff] }
 0x25c   :  { %1278 = vst [vmem:[#allocation2 + $0x69] sm:$0xff] %v1254_v10  ;;  %v1232_v62 = vadd.f32 %v3870_v27, %v1201_v14  ;;  %v2826_v0 = vpop.f32.mrb[22].mxu1  ;;  %2886 = vmatprep.mubr.f32.mxu0 %v1254_v10  ;;  %v1772_v10 = vld [vmem:[#allocation6 + $0x130] sm:$0xff]  ;;  %v1773_v14 = vld [vmem:[#allocation6 + $0x138] sm:$0xff] }
 0x25d   :  { %v1257_v8 = vmax.f32 %v1233_v23, 0.0  ;;  %v1204_v9 = vmul.f32 %v2826_v0, %v3865_v17  ;;  %v1109_v52 = vpop.f32.mrb[23].mxu1  ;;  %2887 = vmatmul.mubr.f32.gmra.mrb[26].mxu0 %v1255_v49  ;;  %v1771_v49 = vld [vmem:[#allocation6 + $0x128] sm:$0xff]  ;;  %v1774_v0 = vld [vmem:[#allocation6 + $0x140] sm:$0xff] }
 0x25e   :  { %v1256_v12 = vmax.f32 %v1232_v62, 0.0  ;;  %v1203_v15 = vmul.f32 %v3865_v17, %v1109_v52  ;;  %3229 = vmatpush3.bf16.msra.mxu0 %v3226_v1  ;;  %v1768_v1 = vld [vmem:[#allocation6 + $0x110] sm:$0xff]  ;;  %v1296_v23 = vld [vmem:[#allocation2 + $0x28] sm:$0xff] }
 0x25f   :  { %1281 = vst [vmem:[#allocation2 + $0x89] sm:$0xff] %v1257_v8  ;;  %v1235_v16 = vadd.f32 %v3870_v27, %v1204_v9  ;;  %3231 = vmatprep.subr.bf16.mxu0 %v3230_v58  ;;  %v3242_v33 = vpack.c.bf16 %v1769_v6, %v1768_v1  ;;  %v1297_v62 = vld [vmem:[#allocation2 + $0x30] sm:$0xff]  ;;  %v1299_v9 = vld [vmem:[#allocation2 + $0x48] sm:$0xff] }
 0x260   :  { %1280 = vst [vmem:[#allocation2 + $0x81] sm:$0xff] %v1256_v12  ;;  %v1234_v20 = vadd.f32 %v3870_v27, %v1203_v15  ;;  %v2829_v22 = vpop.f32.mrb[24].mxu1  ;;  %2889 = vmatprep.mubr.f32.mxu0 %v1256_v12  ;;  %v1776_v52 = vld [vmem:[#allocation6 + $0x150] sm:$0xff]  ;;  %v1777_v12 = vld [vmem:[#allocation6 + $0x158] sm:$0xff] }
 0x261   :  { %v1259_v28 = vmax.f32 %v1235_v16, 0.0  ;;  %v1206_v30 = vmul.f32 %v2829_v22, %v3865_v17  ;;  %v1119_v31 = vpop.f32.mrb[25].mxu1  ;;  %2890 = vmatmul.mubr.f32.gmra.mrb[28].mxu0 %v1257_v8  ;;  %v3254_v8 = vpack.c.bf16 %v1775_v3, %v1774_v0  ;;  %v1300_v15 = vld [vmem:[#allocation2 + $0x50] sm:$0xff]  ;;  %v3258_v16 = vpack.c.bf16 %v1777_v12, %v1776_v52  ;;  %v1779_v22 = vld [vmem:[#allocation6 + $0x168] sm:$0xff] }
 0x262   :  { %v1258_v32 = vmax.f32 %v1234_v20, 0.0  ;;  %v1205_v35 = vmul.f32 %v3865_v17, %v1119_v31  ;;  %3233 = vmatpush3.bf16.msra.mxu0 %v3230_v58  ;;  %v3250_v58 = vpack.c.bf16 %v1773_v14, %v1772_v10  ;;  %v1778_v20 = vld [vmem:[#allocation6 + $0x160] sm:$0xff]  ;;  %v1781_v31 = vld [vmem:[#allocation6 + $0x178] sm:$0xff]  ;;  %v2143_v10 = vld [vmem:[%s4052_s10 + $0x10] sm:$0xff] }
 0x263   :  { %1283 = vst [vmem:[#allocation2 + $0xa1] sm:$0xff] %v1259_v28  ;;  %v1237_v55 = vadd.f32 %v3870_v27, %v1206_v30  ;;  %3235 = vmatprep.subr.bf16.mxu0 %v3234_v19  ;;  %v1302_v53 = vld [vmem:[#allocation2 + $0x68] sm:$0xff]  ;;  %v3262_v26 = vpack.c.bf16 %v1779_v22, %v1778_v20  ;;  %v1780_v30 = vld [vmem:[#allocation6 + $0x170] sm:$0xff]  ;;  %v2144_v14 = vld [vmem:[%s4052_s10 + $0x18] sm:$0xff] }
 0x264   :  { %1282 = vst [vmem:[#allocation2 + $0x91] sm:$0xff] %v1258_v32  ;;  %v1236_v38 = vadd.f32 %v3870_v27, %v1205_v35  ;;  %v2832_v40 = vpop.f32.mrb[26].mxu1  ;;  %2892 = vmatprep.mubr.f32.mxu0 %v1258_v32  ;;  %v3266_v35 = vpack.c.bf16 %v1781_v31, %v1780_v30  ;;  %v2147_v3 = vld [vmem:[%s4052_s10 + $0x30] sm:$0xff]  ;;  %v2150_v52 = vld [vmem:[%s4052_s10 + $0x48] sm:$0xff]  ;;  %v2153_v20 = vld [vmem:[%s4052_s10 + $0x60] sm:$0xff] }
 0x265   :  { %v1261_v42 = vmax.f32 %v1237_v55, 0.0  ;;  %v1208_v43 = vmul.f32 %v2832_v40, %v3865_v17  ;;  %v1129_v48 = vpop.f32.mrb[27].mxu1  ;;  %2893 = vmatmul.mubr.f32.gmra.mrb[30].mxu0 %v1259_v28  ;;  %v1303_v28 = vld [vmem:[#allocation2 + $0x70] sm:$0xff]  ;;  %v2154_v22 = vld [vmem:[%s4052_s10 + $0x68] sm:$0xff]  ;;  %v3972_v31 = vld [vmem:[%s4050_s8] ss:$0 sm:$0xff] }
 0x266   :  { %v1260_v50 = vmax.f32 %v1236_v38, 0.0  ;;  %v1207_v51 = vmul.f32 %v3865_v17, %v1129_v48  ;;  %3237 = vmatpush3.bf16.msra.mxu0 %v3234_v19  ;;  %v1301_v19 = vld [vmem:[#allocation2 + $0x60] sm:$0xff] }
 0x267   :  { %1285 = vst [vmem:[#allocation2 + $0xb1] sm:$0xff] %v1261_v42  ;;  %v1239_v54 = vadd.f32 %v3870_v27, %v1208_v43  ;;  %3239 = vmatprep.subr.bf16.mxu0 %v3238_v36  ;;  %v1304_v32 = vld [vmem:[#allocation2 + $0x80] sm:$0xff]  ;;  %v1305_v55 = vld [vmem:[#allocation2 + $0x88] sm:$0xff] }
 0x268   :  { %1284 = vst [vmem:[#allocation2 + $0xa9] sm:$0xff] %v1260_v50  ;;  %v1238_v60 = vadd.f32 %v3870_v27, %v1207_v51  ;;  %v2835_v59 = vpop.f32.mrb[28].mxu1  ;;  %2895 = vmatprep.mubr.f32.mxu0 %v1260_v50 }
 0x269   :  { %v1263_v63 = vmax.f32 %v1239_v54, 0.0  ;;  %v1210_v4 = vmul.f32 %v2835_v59, %v3865_v17  ;;  %v1139_v7 = vpop.f32.mrb[29].mxu1  ;;  %2896 = vmatmul.mubr.f32.gmra.mrb[32].mxu0 %v1261_v42  ;;  %v1742_v59 = vld [vmem:[#allocation2 + $0x2] sm:$0xff] }
 0x26a   :  { %v1262_v13 = vmax.f32 %v1238_v60, 0.0  ;;  %v1209_v11 = vmul.f32 %v3865_v17, %v1139_v7  ;;  %v1307_v38 = vld [vmem:[#allocation2 + $0xa0] sm:$0xff] }
 0x26b   :  { %1287 = vst [vmem:[#allocation2 + $0xc9] sm:$0xff] %v1263_v63  ;;  %v1241_v21 = vadd.f32 %v3870_v27, %v1210_v4  ;;  %v1744_v4 = vld [vmem:[#allocation2 + $0x12] sm:$0xff]  ;;  %v1745_v7 = vld [vmem:[#allocation2 + $0x22] sm:$0xff] }
 0x26c   :  { %1286 = vst [vmem:[#allocation2 + $0xc1] sm:$0xff] %v1262_v13  ;;  %v1240_v25 = vadd.f32 %v3870_v27, %v1209_v11  ;;  %v2838_v29 = vpop.f32.mrb[30].mxu1  ;;  %2898 = vmatprep.mubr.f32.mxu0 %v1262_v13  ;;  %v1746_v13 = vld [vmem:[#allocation2 + $0x2a] sm:$0xff]  ;;  %v1747_v11 = vld [vmem:[#allocation2 + $0x32] sm:$0xff] }
 0x26d   :  { %v1265_v37 = vmax.f32 %v1241_v21, 0.0  ;;  %v1212_v39 = vmul.f32 %v2838_v29, %v3865_v17  ;;  %v1149_v24 = vpop.f32.mrb[31].mxu1  ;;  %2899 = vmatmul.mubr.f32.gmra.mrb[34].mxu0 %v1263_v63  ;;  %v1743_v63 = vld [vmem:[#allocation2 + $0xa] sm:$0xff]  ;;  %v1748_v21 = vld [vmem:[#allocation2 + $0x42] sm:$0xff]  ;;  %v1750_v29 = vld [vmem:[#allocation2 + $0x52] sm:$0xff] }
 0x26e   :  { %v1264_v34 = vmax.f32 %v1240_v25, 0.0  ;;  %v1211_v41 = vmul.f32 %v3865_v17, %v1149_v24  ;;  %v1293_v17 = vld [vmem:[#allocation2 + $0x8] sm:$0xff]  ;;  %v1753_v24 = vld [vmem:[#allocation2 + $0x72] sm:$0xff] }
 0x26f   :  { %1289 = vst [vmem:[#allocation2 + $0xe1] sm:$0xff] %v1265_v37  ;;  %v1243_v45 = vadd.f32 %v3870_v27, %v1212_v39  ;;  %v1308_v40 = vld [vmem:[#allocation2 + $0xa8] sm:$0xff]  ;;  %v1309_v42 = vld [vmem:[#allocation2 + $0xb0] sm:$0xff] }
 0x270   :  { %1288 = vst [vmem:[#allocation2 + $0xd1] sm:$0xff] %v1264_v34  ;;  %v1242_v47 = vadd.f32 %v3870_v27, %v1211_v41  ;;  %2901 = vmatprep.mubr.f32.mxu0 %v1264_v34  ;;  %v3246_v27 = vpack.c.bf16 %v1771_v49, %v1770_v44  ;;  %v1749_v25 = vld [vmem:[#allocation2 + $0x4a] sm:$0xff]  ;;  %v1754_v34 = vld [vmem:[#allocation2 + $0x82] sm:$0xff] }
 0x271   :  { %v1267_v56 = vmax.f32 %v1243_v45, 0.0  ;;  %2902 = vmatmul.mubr.f32.gmra.mrb[36].mxu0 %v1265_v37  ;;  %v1751_v37 = vld [vmem:[#allocation2 + $0x62] sm:$0xff]  ;;  %v1752_v39 = vld [vmem:[#allocation2 + $0x6a] sm:$0xff]  ;;  %v1756_v45 = vld [vmem:[#allocation2 + $0x92] sm:$0xff] }
 0x272   :  { %v1266_v61 = vmax.f32 %v1242_v47, 0.0  ;;  %v1755_v41 = vld [vmem:[#allocation2 + $0x8a] sm:$0xff]  ;;  %v1757_v47 = vld [vmem:[#allocation2 + $0xa2] sm:$0xff] }
 0x273   :  { %1291 = vst [vmem:[#allocation2 + $0xf1] sm:$0xff] %v1267_v56  ;;  %v1310_v43 = vld [vmem:[#allocation2 + $0xc0] sm:$0xff]  ;;  %v1311_v48 = vld [vmem:[#allocation2 + $0xc8] sm:$0xff] }
 0x274   :  { %1290 = vst [vmem:[#allocation2 + $0xe9] sm:$0xff] %v1266_v61  ;;  %2904 = vmatprep.mubr.f32.mxu0 %v1266_v61  ;;  %v1759_v61 = vld [vmem:[#allocation2 + $0xb2] sm:$0xff]  ;;  %v1760_v1 = vld [vmem:[#allocation2 + $0xc2] sm:$0xff] }
 0x275   :  { %2905 = vmatmul.mubr.f32.gmra.mrb[38].mxu0 %v1267_v56  ;;  %v1758_v56 = vld [vmem:[#allocation2 + $0xaa] sm:$0xff]  ;;  %v2141_v49 = vld [vmem:[%s4052_s10] sm:$0xff] }
 0x276   :  { %2939 = vmatprep.mubr.f32.mxu0 %v1292_v18  ;;  %v1313_v51 = vld [vmem:[#allocation2 + $0xe0] sm:$0xff] }
 0x277   :  { %v1312_v50 = vld [vmem:[#allocation2 + $0xd0] sm:$0xff] }
 0x278   :  { %v1761_v6 = vld [vmem:[#allocation2 + $0xca] sm:$0xff]  ;;  %v1762_v18 = vld [vmem:[#allocation2 + $0xd2] sm:$0xff] }
 0x279   :  { %2940 = vmatmul.mubr.f32.vlgmr.msra.gmra.mrb[16].mxu0 %v1293_v17 }
 0x27a   :  { %3241 = vmatpush3.bf16.msra.mxu0 %v3238_v36  ;;  %2942 = vmatprep.mubr.f32.mxu0 %v1294_v57  ;;  %v1306_v36 = vld [vmem:[#allocation2 + $0x90] sm:$0xff]  ;;  %v2142_v57 = vld [vmem:[%s4052_s10 + $0x8] sm:$0xff] }
 0x27b   :  { %3243 = vmatprep.subr.bf16.mxu0 %v3242_v33  ;;  %v1314_v54 = vld [vmem:[#allocation2 + $0xe8] sm:$0xff]  ;;  %v1315_v60 = vld [vmem:[#allocation2 + $0xf0] sm:$0xff] }
 0x27c   :  { %v1764_v17 = vld [vmem:[#allocation2 + $0xea] sm:$0xff]  ;;  %v1765_v44 = vld [vmem:[#allocation2 + $0xf2] sm:$0xff] }
 0x27d   :  { %2943 = vmatmul.mubr.f32.gmra.mrb[18].mxu0 %v1295_v2  ;;  %v3481_v2 = vmov 0.0|0.0  }
 0x27e   :  { %2945 = vmatprep.mubr.f32.mxu0 %v1296_v23  ;;  %3245 = vmatpush3.bf16.msra.mxu0 %v3242_v33  ;;  %v1763_v33 = vld [vmem:[#allocation2 + $0xe2] sm:$0xff]  ;;  %v3274_v23 = vpack.c.bf16 %v2144_v14, %v2143_v10 }
 0x27f   :  { %3247 = vmatprep.subr.bf16.mxu0 %v3246_v27  ;;  %3270 = vmatprep.subr.bf16.mxu1 %v3481_v2 }
 0x281   :  { %2946 = vmatmul.mubr.f32.gmra.mrb[20].mxu0 %v1297_v62  ;;  %v2146_v62 = vld [vmem:[%s4052_s10 + $0x28] sm:$0xff] }
 0x282   :  { %2948 = vmatprep.mubr.f32.mxu0 %v1298_v5  ;;  %3249 = vmatpush3.bf16.msra.mxu0 %v3246_v27  ;;  %v3271_v27 = vpack.c.bf16 %v2142_v57, %v2141_v49  ;;  %v2148_v5 = vld [vmem:[%s4052_s10 + $0x38] sm:$0xff] }
 0x283   :  { %3251 = vmatprep.subr.bf16.mxu0 %v3250_v58 }
 0x284   :  { %3272 = vmatpush3.bf16.msra.mxu1 %v3271_v27 }
 0x285   :  { %2949 = vmatmul.mubr.f32.gmra.mrb[22].mxu0 %v1299_v9  ;;  %3273 = vmatprep.subr.bf16.mxu1 %v3481_v2  ;;  %v2149_v9 = vld [vmem:[%s4052_s10 + $0x40] sm:$0xff] }
 0x286   :  { %2951 = vmatprep.mubr.f32.mxu0 %v1300_v15  ;;  %3253 = vmatpush3.bf16.msra.mxu0 %v3250_v58  ;;  %v2145_v58 = vld [vmem:[%s4052_s10 + $0x20] sm:$0xff]  ;;  %v3283_v12 = vpack.c.bf16 %v2150_v52, %v2149_v9  ;;  %v2151_v15 = vld [vmem:[%s4052_s10 + $0x50] sm:$0xff] }
 0x287   :  { %3255 = vmatprep.subr.bf16.mxu0 %v3254_v8  ;;  %v3277_v0 = vpack.c.bf16 %v2146_v62, %v2145_v58 }
 0x288   :  { %3275 = vmatpush3.bf16.msra.mxu1 %v3274_v23 }
 0x289   :  { %2952 = vmatmul.mubr.f32.gmra.mrb[24].mxu0 %v1301_v19  ;;  %3276 = vmatprep.subr.bf16.mxu1 %v3481_v2 }
 0x28a   :  { %2954 = vmatprep.mubr.f32.mxu0 %v1302_v53  ;;  %3257 = vmatpush3.bf16.msra.mxu0 %v3254_v8  ;;  %v3280_v8 = vpack.c.bf16 %v2148_v5, %v2147_v3  ;;  %v3289_v53 = vpack.c.bf16 %v2154_v22, %v2153_v20 }
 0x28b   :  { %3259 = vmatprep.subr.bf16.mxu0 %v3258_v16 }
 0x28c   :  { %3278 = vmatpush3.bf16.msra.mxu1 %v3277_v0 }
 0x28d   :  { %2955 = vmatmul.mubr.f32.gmra.mrb[26].mxu0 %v1303_v28  ;;  %3279 = vmatprep.subr.bf16.mxu1 %v3481_v2  ;;  %v2156_v28 = vld [vmem:[%s4052_s10 + $0x78] sm:$0xff] }
 0x28e   :  { %2957 = vmatprep.mubr.f32.mxu0 %v1304_v32  ;;  %3261 = vmatpush3.bf16.msra.mxu0 %v3258_v16  ;;  %v2152_v16 = vld [vmem:[%s4052_s10 + $0x58] sm:$0xff] }
 0x28f   :  { %3263 = vmatprep.subr.bf16.mxu0 %v3262_v26  ;;  %v3286_v19 = vpack.c.bf16 %v2152_v16, %v2151_v15 }
 0x290   :  { %3281 = vmatpush3.bf16.msra.mxu1 %v3280_v8 }
 0x291   :  { %2958 = vmatmul.mubr.f32.gmra.mrb[28].mxu0 %v1305_v55  ;;  %3282 = vmatprep.subr.bf16.mxu1 %v3481_v2 }
 0x292   :  { %2960 = vmatprep.mubr.f32.mxu0 %v1306_v36  ;;  %3265 = vmatpush3.bf16.msra.mxu0 %v3262_v26  ;;  %v2155_v26 = vld [vmem:[%s4052_s10 + $0x70] sm:$0xff]  ;;  %s3483_s10 = smov [#allocation8]  }
 0x293   :  { %3267 = vmatprep.subr.bf16.mxu0 %v3266_v35  ;;  %v3292_v30 = vpack.c.bf16 %v2156_v28, %v2155_v26  ;;  %s2273_s28 = sshll.u32 %s3483_s10, 4  ;;  %s2274_s28 = int_to_ptr.vmem [resolvable:$true] %s2273_s28 }
 0x294   :  { %3284 = vmatpush3.bf16.msra.mxu1 %v3283_v12  ;;  %s3448_s29 = scalar_lea.vmem %s2274_s28, 128  ;;  %p3453_p3 = scmp.lt.s32.totalorder %s2274_s28, %s2274_s28 }
 0x295   :  { %2961 = vmatmul.mubr.f32.gmra.mrb[30].mxu0 %v1307_v38  ;;  %3285 = vmatprep.subr.bf16.mxu1 %v3481_v2  ;;  %p3449_p2 = scmp.ne.s32.totalorder %s2274_s28, %s3448_s29  ;;  %p3454_p4 = scmp.lt.s32.totalorder %s3448_s29, %s3448_s29 }
 0x296   :  { %2963 = vmatprep.mubr.f32.mxu0 %v1308_v40  ;;  %3269 = vmatpush3.bf16.msra.mxu0 %v3266_v35  ;;  %v3977_v35 = vld [vmem:[%s4051_s9] ss:$0 sm:$0xff] }
 0x297   :  { %p3455_p5 = por %p3454_p4, %p3453_p3 }
 0x298   :  { %3287 = vmatpush3.bf16.msra.mxu1 %v3286_v19 }
 0x299   :  { %2964 = vmatmul.mubr.f32.gmra.mrb[32].mxu0 %v1309_v42  ;;  %3288 = vmatprep.subr.bf16.mxu1 %v3481_v2  ;;  %p3456_p6 = pnand %p3455_p5, %p3449_p2 }
 0x29a   :  { %2966 = vmatprep.mubr.f32.mxu0 %v1310_v43 }
 0x29c   :  { %3290 = vmatpush3.bf16.msra.mxu1 %v3289_v53 }
 0x29d   :  { %2967 = vmatmul.mubr.f32.gmra.mrb[34].mxu0 %v1311_v48  ;;  %3291 = vmatprep.subr.bf16.mxu1 %v3481_v2 }
 0x29e   :  { %2969 = vmatprep.mubr.f32.mxu0 %v1312_v50 }
 0x2a0   :  { %3293 = vmatpush3.bf16.msra.mxu1 %v3292_v30 }
 0x2a1   :  { %2970 = vmatmul.mubr.f32.gmra.mrb[36].mxu0 %v1313_v51 }
 0x2a2   :  { %2972 = vmatprep.mubr.f32.mxu0 %v1314_v54 }
 0x2a5   :  { %2973 = vmatmul.mubr.f32.gmra.mrb[38].mxu0 %v1315_v60 }
 0x2a6   :  { %3007 = vmatprep.mubr.f32.mxu0 %v1742_v59 }
 0x2a9   :  { %3008 = vmatmul.mubr.f32.vlgmr.msra.gmra.mrb[16].mxu0 %v1743_v63 }
 0x2aa   :  { %3010 = vmatprep.mubr.f32.mxu0 %v1744_v4 }
 0x2ad   :  { %3011 = vmatmul.mubr.f32.gmra.mrb[18].mxu0 %v1745_v7 }
 0x2ae   :  { %3013 = vmatprep.mubr.f32.mxu0 %v1746_v13 }
 0x2b1   :  { %3014 = vmatmul.mubr.f32.gmra.mrb[20].mxu0 %v1747_v11 }
 0x2b2   :  { %3016 = vmatprep.mubr.f32.mxu0 %v1748_v21 }
 0x2b5   :  { %3017 = vmatmul.mubr.f32.gmra.mrb[22].mxu0 %v1749_v25 }
 0x2b6   :  { %3019 = vmatprep.mubr.f32.mxu0 %v1750_v29 }
 0x2b9   :  { %3020 = vmatmul.mubr.f32.gmra.mrb[24].mxu0 %v1751_v37 }
 0x2ba   :  { %3022 = vmatprep.mubr.f32.mxu0 %v1752_v39 }
 0x2bd   :  { %3023 = vmatmul.mubr.f32.gmra.mrb[26].mxu0 %v1753_v24 }
 0x2be   :  { %3025 = vmatprep.mubr.f32.mxu0 %v1754_v34 }
 0x2c1   :  { %3026 = vmatmul.mubr.f32.gmra.mrb[28].mxu0 %v1755_v41 }
 0x2c2   :  { %3028 = vmatprep.mubr.f32.mxu0 %v1756_v45 }
 0x2c5   :  { %3029 = vmatmul.mubr.f32.gmra.mrb[30].mxu0 %v1757_v47 }
 0x2c6   :  { %3031 = vmatprep.mubr.f32.mxu0 %v1758_v56 }
 0x2c9   :  { %3032 = vmatmul.mubr.f32.gmra.mrb[32].mxu0 %v1759_v61 }
 0x2ca   :  { %3034 = vmatprep.mubr.f32.mxu0 %v1760_v1 }
 0x2cd   :  { %3035 = vmatmul.mubr.f32.gmra.mrb[34].mxu0 %v1761_v6 }
 0x2ce   :  { %3037 = vmatprep.mubr.f32.mxu0 %v1762_v18 }
 0x2d1   :  { %3038 = vmatmul.mubr.f32.gmra.mrb[36].mxu0 %v1763_v33 }
 0x2d2   :  { %3040 = vmatprep.mubr.f32.mxu0 %v1764_v17 }
 0x2d5   :  { %3041 = vmatmul.mubr.f32.gmra.mrb[38].mxu0 %v1765_v44 }
 0x37c   :  { %v3009_v32 = vpop.f32.mrb[16].mxu0 }
 0x37d   :  { %v1999_v55 = vmul.f32 %v3009_v32, %v3972_v31  ;;  %v1848_v36 = vpop.f32.mrb[17].mxu0 }
 0x37e   :  { %v1998_v46 = vmul.f32 %v3972_v31, %v1848_v36 }
 0x37f   :  { %v2030_v38 = vadd.f32 %v3977_v35, %v1999_v55 }
 0x380   :  { %v2029_v40 = vadd.f32 %v3977_v35, %v1998_v46  ;;  %v3012_v42 = vpop.f32.mrb[18].mxu0 }
 0x381   :  { %v2054_v43 = vmax.f32 %v2030_v38, 0.0  ;;  %v1858_v48 = vpop.f32.mrb[19].mxu0  ;;  %v2001_v51 = vmul.f32 %v3012_v42, %v3972_v31 }
 0x382   :  { %v2053_v50 = vmax.f32 %v2029_v40, 0.0  ;;  %v2000_v54 = vmul.f32 %v3972_v31, %v1858_v48 }
 0x383   :  { %v2032_v13 = vadd.f32 %v3977_v35, %v2001_v51 }
 0x384   :  { %v2077_v60 = vadd.f32 %v2054_v43, %v2053_v50  ;;  %v2031_v59 = vadd.f32 %v3977_v35, %v2000_v54  ;;  %v3015_v63 = vpop.f32.mrb[20].mxu0 }
 0x385   :  { %v2003_v4 = vmul.f32 %v3015_v63, %v3972_v31  ;;  %v1868_v7 = vpop.f32.mrb[21].mxu0  ;;  %v2056_v41 = vmax.f32 %v2032_v13, 0.0 }
 0x386   :  { %v2055_v11 = vmax.f32 %v2031_v59, 0.0  ;;  %v2002_v21 = vmul.f32 %v3972_v31, %v1868_v7 }
 0x387   :  { %v2034_v29 = vadd.f32 %v3977_v35, %v2003_v4 }
 0x388   :  { %v2078_v25 = vadd.f32 %v2077_v60, %v2055_v11  ;;  %v2033_v37 = vadd.f32 %v3977_v35, %v2002_v21  ;;  %v3018_v39 = vpop.f32.mrb[22].mxu0 }
 0x389   :  { %v2005_v24 = vmul.f32 %v3018_v39, %v3972_v31  ;;  %v1878_v34 = vpop.f32.mrb[23].mxu0  ;;  %v2058_v6 = vmax.f32 %v2034_v29, 0.0 }
 0x38a   :  { %v2079_v45 = vrot.slane %v2078_v25, 4  ;;  %v2057_v47 = vmax.f32 %v2033_v37, 0.0  ;;  %v2004_v56 = vmul.f32 %v3972_v31, %v1878_v34 }
 0x38b   :  { %v2036_v61 = vadd.f32 %v3977_v35, %v2005_v24 }
 0x38c   :  { %v2080_v1 = vadd.f32 %v2079_v45, %v2078_v25  ;;  %v2085_v18 = vadd.f32 %v2057_v47, %v2056_v41  ;;  %v2035_v33 = vadd.f32 %v3977_v35, %v2004_v56  ;;  %v3021_v17 = vpop.f32.mrb[24].mxu0 }
 0x38d   :  { %v2060_v44 = vmax.f32 %v2036_v61, 0.0  ;;  %v2007_v49 = vmul.f32 %v3021_v17, %v3972_v31  ;;  %v1888_v57 = vpop.f32.mrb[25].mxu0 }
 0x38e   :  { %v2081_v27 = vrot.slane %v2080_v1, 2  ;;  %v2086_v2 = vadd.f32 %v2085_v18, %v2058_v6  ;;  %v2059_v10 = vmax.f32 %v2035_v33, 0.0  ;;  %v2006_v14 = vmul.f32 %v3972_v31, %v1888_v57 }
 0x38f   :  { %v2038_v5 = vadd.f32 %v3977_v35, %v2007_v49 }
 0x390   :  { %v2087_v23 = vrot.slane %v2086_v2, 4  ;;  %v2093_v58 = vadd.f32 %v2060_v44, %v2059_v10  ;;  %v2037_v62 = vadd.f32 %v3977_v35, %v2006_v14  ;;  %v3024_v0 = vpop.f32.mrb[26].mxu0  ;;  %v2082_v3 = vadd.f32 %v2081_v27, %v2080_v1 }
 0x391   :  { %v2009_v8 = vmul.f32 %v3024_v0, %v3972_v31  ;;  %v1898_v9 = vpop.f32.mrb[27].mxu0  ;;  %v2062_v28 = vmax.f32 %v2038_v5, 0.0 }
 0x392   :  { %v2088_v52 = vadd.f32 %v2087_v23, %v2086_v2  ;;  %v2061_v12 = vmax.f32 %v2037_v62, 0.0  ;;  %v2008_v15 = vmul.f32 %v3972_v31, %v1898_v9  ;;  %v2083_v26 = vrot.slane %v2082_v3, 1 }
 0x393   :  { %v2040_v16 = vadd.f32 %v3977_v35, %v2009_v8 }
 0x394   :  { %v2089_v19 = vrot.slane %v2088_v52, 2  ;;  %v2094_v20 = vadd.f32 %v2093_v58, %v2061_v12  ;;  %v2039_v22 = vadd.f32 %v3977_v35, %v2008_v15  ;;  %v3027_v53 = vpop.f32.mrb[28].mxu0  ;;  %v2084_v60 = vadd.f32 %v2083_v26, %v2082_v3 }
 0x395   :  { %v2011_v30 = vmul.f32 %v3027_v53, %v3972_v31  ;;  %v1908_v32 = vpop.f32.mrb[29].mxu0  ;;  %v2064_v40 = vmax.f32 %v2040_v16, 0.0 }
 0x396   :  { %v2090_v55 = vadd.f32 %v2089_v19, %v2088_v52  ;;  %v2095_v36 = vrot.slane %v2094_v20, 4  ;;  %v2063_v46 = vmax.f32 %v2039_v22, 0.0  ;;  %v2010_v38 = vmul.f32 %v3972_v31, %v1908_v32 }
 0x397   :  { %v2042_v42 = vadd.f32 %v3977_v35, %v2011_v30 }
 0x398   :  { %v2091_v43 = vrot.slane %v2090_v55, 1  ;;  %v2096_v48 = vadd.f32 %v2095_v36, %v2094_v20  ;;  %v2101_v50 = vadd.f32 %v2063_v46, %v2062_v28  ;;  %v2041_v51 = vadd.f32 %v3977_v35, %v2010_v38  ;;  %v3030_v54 = vpop.f32.mrb[30].mxu0 }
 0x399   :  { %v2066_v59 = vmax.f32 %v2042_v42, 0.0  ;;  %v2013_v63 = vmul.f32 %v3030_v54, %v3972_v31  ;;  %v1918_v4 = vpop.f32.mrb[31].mxu0 }
 0x39a   :  { %v2092_v7 = vadd.f32 %v2091_v43, %v2090_v55  ;;  %v2097_v13 = vrot.slane %v2096_v48, 2  ;;  %v2102_v11 = vadd.f32 %v2101_v50, %v2064_v40  ;;  %v2065_v21 = vmax.f32 %v2041_v51, 0.0 }
 0x39b   :  { %v2012_v25 = vmul.f32 %v3972_v31, %v1918_v4  ;;  %v2044_v41 = vadd.f32 %v3977_v35, %v2013_v63 }
 0x39c   :  { %v2173_v29 = vsel %vm2172_vm3, %v2092_v7, %v2084_v60  ;;  %v2098_v37 = vadd.f32 %v2097_v13, %v2096_v48  ;;  %v2103_v39 = vrot.slane %v2102_v11, 4  ;;  %v2109_v24 = vadd.f32 %v2066_v59, %v2065_v21  ;;  %v3033_v34 = vpop.f32.mrb[32].mxu0 }
 0x39d   :  { %v2043_v45 = vadd.f32 %v3977_v35, %v2012_v25  ;;  %v2015_v47 = vmul.f32 %v3033_v34, %v3972_v31  ;;  %v1928_v56 = vpop.f32.mrb[33].mxu0  ;;  %v2068_v27 = vmax.f32 %v2044_v41, 0.0 }
 0x39e   :  { %v2099_v61 = vrot.slane %v2098_v37, 1  ;;  %v2104_v1 = vadd.f32 %v2103_v39, %v2102_v11  ;;  %v2014_v6 = vmul.f32 %v3972_v31, %v1928_v56 }
 0x39f   :  { %v2067_v18 = vmax.f32 %v2043_v45, 0.0  ;;  %v2046_v44 = vadd.f32 %v3977_v35, %v2015_v47 }
 0x3a0   :  { %v2100_v33 = vadd.f32 %v2099_v61, %v2098_v37  ;;  %v2105_v17 = vrot.slane %v2104_v1, 2  ;;  %v2045_v49 = vadd.f32 %v3977_v35, %v2014_v6  ;;  %v3036_v57 = vpop.f32.mrb[34].mxu0 }
 0x3a1   :  { %v2110_v2 = vadd.f32 %v2109_v24, %v2067_v18  ;;  %v2017_v10 = vmul.f32 %v3036_v57, %v3972_v31  ;;  %v1938_v14 = vpop.f32.mrb[35].mxu0  ;;  %v2070_v9 = vmax.f32 %v2046_v44, 0.0 }
 0x3a2   :  { %v2175_v23 = vsel %vm2174_vm4, %v2100_v33, %v2173_v29  ;;  %v2106_v58 = vadd.f32 %v2105_v17, %v2104_v1  ;;  %v2069_v62 = vmax.f32 %v2045_v49, 0.0  ;;  %v2016_v0 = vmul.f32 %v3972_v31, %v1938_v14 }
 0x3a3   :  { %v2111_v3 = vrot.slane %v2110_v2, 4  ;;  %v2048_v5 = vadd.f32 %v3977_v35, %v2017_v10  ;;  %v2314_v10 = vld [vmem:[%s4053_s11] ss:$0 sm:$0xff] }
 0x3a4   :  { %v2107_v8 = vrot.slane %v2106_v58, 1  ;;  %v2117_v52 = vadd.f32 %v2069_v62, %v2068_v27  ;;  %v2047_v12 = vadd.f32 %v3977_v35, %v2016_v0  ;;  %v3039_v15 = vpop.f32.mrb[36].mxu0 }
 0x3a5   :  { %v2112_v16 = vadd.f32 %v2111_v3, %v2110_v2  ;;  %v2072_v19 = vmax.f32 %v2048_v5, 0.0  ;;  %v2019_v20 = vmul.f32 %v3039_v15, %v3972_v31  ;;  %v1948_v22 = vpop.f32.mrb[37].mxu0 }
 0x3a6   :  { %v2108_v53 = vadd.f32 %v2107_v8, %v2106_v58  ;;  %v2118_v26 = vadd.f32 %v2117_v52, %v2070_v9  ;;  %v2071_v28 = vmax.f32 %v2047_v12, 0.0  ;;  %v2018_v30 = vmul.f32 %v3972_v31, %v1948_v22 }
 0x3a7   :  { %v2113_v32 = vrot.slane %v2112_v16, 2  ;;  %v2050_v51 = vadd.f32 %v3977_v35, %v2019_v20 }
 0x3a8   :  { %v2119_v55 = vrot.slane %v2118_v26, 4  ;;  %v2125_v36 = vadd.f32 %v2072_v19, %v2071_v28  ;;  %v2049_v46 = vadd.f32 %v3977_v35, %v2018_v30  ;;  %v3042_v38 = vpop.f32.mrb[38].mxu0  ;;  %v2177_v40 = vsel %vm2176_vm5, %v2108_v53, %v2175_v23 }
 0x3a9   :  { %v2114_v42 = vadd.f32 %v2113_v32, %v2112_v16  ;;  %v2021_v43 = vmul.f32 %v3042_v38, %v3972_v31  ;;  %v1958_v48 = vpop.f32.mrb[39].mxu0  ;;  %v2074_v25 = vmax.f32 %v2050_v51, 0.0 }
 0x3aa   :  { %v2120_v50 = vadd.f32 %v2119_v55, %v2118_v26  ;;  %v2073_v54 = vmax.f32 %v2049_v46, 0.0  ;;  %v2020_v60 = vmul.f32 %v3972_v31, %v1958_v48 }
 0x3ab   :  { %v2115_v59 = vrot.slane %v2114_v42, 1  ;;  %v2052_v7 = vadd.f32 %v3977_v35, %v2021_v43 }
 0x3ac   :  { %v2121_v63 = vrot.slane %v2120_v50, 2  ;;  %v2126_v4 = vadd.f32 %v2125_v36, %v2073_v54  ;;  %v2051_v13 = vadd.f32 %v3977_v35, %v2020_v60 }
 0x3ad   :  { %v2116_v11 = vadd.f32 %v2115_v59, %v2114_v42  ;;  %v2076_v41 = vmax.f32 %v2052_v7, 0.0 }
 0x3ae   :  { %v2122_v21 = vadd.f32 %v2121_v63, %v2120_v50  ;;  %v2127_v29 = vrot.slane %v2126_v4, 4  ;;  %v2075_v37 = vmax.f32 %v2051_v13, 0.0 }
 0x3af   :  { %v2179_v39 = vsel %vm2178_vm6, %v2116_v11, %v2177_v40 }
 0x3b0   :  { %v2123_v24 = vrot.slane %v2122_v21, 1  ;;  %v2128_v34 = vadd.f32 %v2127_v29, %v2126_v4  ;;  %v2133_v45 = vadd.f32 %v2075_v37, %v2074_v25 }
 0x3b2   :  { %v2124_v31 = vadd.f32 %v2123_v24, %v2122_v21  ;;  %v2129_v47 = vrot.slane %v2128_v34, 2  ;;  %v2134_v56 = vadd.f32 %v2133_v45, %v2076_v41 }
 0x3b4   :  { %v2130_v61 = vadd.f32 %v2129_v47, %v2128_v34  ;;  %v2135_v1 = vrot.slane %v2134_v56, 4  ;;  %v2181_v6 = vsel %vm2180_vm7, %v2124_v31, %v2179_v39 }
 0x3b6   :  { %v2131_v18 = vrot.slane %v2130_v61, 1  ;;  %v2136_v33 = vadd.f32 %v2135_v1, %v2134_v56 }
 0x3b8   :  { %v2132_v35 = vadd.f32 %v2131_v18, %v2130_v61  ;;  %v2137_v17 = vrot.slane %v2136_v33, 2 }
 0x3ba   :  { %v2138_v44 = vadd.f32 %v2137_v17, %v2136_v33  ;;  %v2183_v49 = vsel %vm2182_vm8, %v2132_v35, %v2181_v6 }
 0x3bc   :  { %v2139_v57 = vrot.slane %v2138_v44, 1 }
 0x3be   :  { %v2140_v27 = vadd.f32 %v2139_v57, %v2138_v44 }
 0x3c0   :  { %v2185_v2 = vsel %vm2184_vm9, %v2140_v27, %v2183_v49 }
 0x3c1   :  { %3076 = vmatmul.mubr.f32.vlgmr.msra.gmra.mrb[32].mxu1 %v2185_v2 }
 0x494   :  { %v2253_v14 = vpop.f32.mrb[32].mxu1 }
 0x495   :  { %v2254_v23 = vadd.f32 %v2314_v10, %v2253_v14  ;;  %v3077_v58 = vpop.f32.mrb[33].mxu1 }
 0x497   :  { %2257 = vmax.xlane.f32.xlu0 %v2254_v23 }
 0x524   :  { %v2258_v62 = vpop.xlane.xlu0 %2257 }
 0x525   :  { %v2259_v0 = vsub.f32 %v2254_v23, %v2258_v62 }
 0x527   :  { %v2260_v3 = vmul.f32 1.442695, %v2259_v0 }
 0x529   :  { %3400 = vpow2.f32 %v2260_v3 }
 0x533   :  { %v3401_v5 = vpop.eup %3400 }
 0x534   :  { %2262 = vadd.xlane.f32.xlu0 %v3401_v5 }
 0x5c1   :  { %v2263_v8 = vpop.xlane.xlu0 %2262 }
 0x5c2   :  { %3402 = vrcp.f32 %v2263_v8 }
 0x5cc   :  { %v3403_v9 = vpop.eup %3402 }
 0x5cd   :  { %v2265_v52 = vmul.f32 %v3403_v9, %v3401_v5 }
 0x5cf   :  { %2266 = vst [vmem:[#allocation8] sm:$0xff] %v2265_v52 }
 0x5d0   :  { %3459 = shalt.err (!%p3456_p6)
}
 0x5d1   :  { %s3460_s15 = scalar_lea.hbm %s4054_s12, 128 }
 0x5d2   :  { %p3461_p7 = scmp.ne.s32.totalorder %s4054_s12, %s3460_s15  ;;  %p3464_p8 = scmp.lt.u32.totalorder %s3460_s15, %s4054_s12 }
 0x5d4   :  { %p3466_p9 = pnand %p3464_p8, %p3461_p7 }
 0x5d6   :  { %3469 = shalt.err (!%p3466_p9)
}
 0x5d7   :  { %2276 = dma.vmem_to_hbm [thread:$0]  %s2274_s28, 128, %s4054_s12, [#allocation5]  }
 0x5d8   :  { %3474 = dma.done.wait [#allocation5], 128  }
 0x5d9   :  { %3475 = vsyncadd [#allocation5], 4294967168 }
 0x5da   :  { %2280 = vsyncpa [#allocation4], 1 }
 0x5db   :  { %2281 = vsyncpa [#allocation7], 1 }
 0x5dc   :  { %2282 = vsyncpa [#allocation5], 1 }

</bundles_post_ra>
